<compile_context>
chip_gen: v5e
topology: v5e:2x2
jax: 0.10.0
libtpu: 0.0.40
codegen_flags: <defaults>
</compile_context>

<pallas_src>
import jax
import jax.numpy as jnp
from jax import lax
from jax.experimental import pallas as pl
from jax.experimental.pallas import tpu as pltpu


# ------------------------------ fused kernel ------------------------------- #

def _bottleneck_kernel(x_ref, w1_ref, b1_ref, w2_ref, b2_ref, w3_ref, b3_ref,
                       o_ref):
    """Fused Bottleneck on one NHWC image tile.

    x_ref : [1, H, W, Cin]   input activation tile (also the residual)
    w1_ref: [Cin, Cmid]      1x1 conv, BN1 scale folded in
    w2_ref: [9*Cmid, Cmid]   grouped 3x3 conv as tap-major block-diag im2col
                             weight, BN2 scale folded in
    w3_ref: [Cmid, Cout]     1x1 conv, BN3 scale folded in
    b*_ref: [1, C]           folded BN biases (float32)
    o_ref : [1, H, W, Cout]
    """
    _, h, w, cin = x_ref.shape
    cmid = w1_ref.shape[1]
    cout = w3_ref.shape[1]
    m = h * w
    cdt = w1_ref.dtype

    x = x_ref[...].reshape(m, cin)

    # ---- stage 1: 1x1 conv + bn1 + relu (result stays in VMEM) -------------
    h1 = jnp.dot(x.astype(cdt), w1_ref[...],
                 preferred_element_type=jnp.float32)
    h1 = jnp.maximum(h1 + b1_ref[...], 0.0)

    # ---- stage 2: grouped 3x3 conv + bn2 + relu -----------------------------
    # conv2 zero-pads its *input* h1 (not x).  Pad h1 spatially, gather the
    # nine taps into a single [M, 9*Cmid] im2col slab and do one K=9*Cmid
    # matmul against the block-diagonal weight.
    h1hw = h1.reshape(h, w, cmid).astype(cdt)
    zc = jnp.zeros((h, 1, cmid), cdt)
    zr = jnp.zeros((1, w + 2, cmid), cdt)
    h1p = jnp.concatenate([zc, h1hw, zc], axis=1)           # [H,   W+2, Cmid]
    h1p = jnp.concatenate([zr, h1p, zr], axis=0)            # [H+2, W+2, Cmid]
    cols = [h1p[kh:kh + h, kw:kw + w, :].reshape(m, cmid)
            for kh in range(3) for kw in range(3)]
    patch = jnp.concatenate(cols, axis=-1)                  # [M, 9*Cmid]
    h2 = jnp.dot(patch, w2_ref[...], preferred_element_type=jnp.float32)
    h2 = jnp.maximum(h2 + b2_ref[...], 0.0)

    # ---- stage 3: 1x1 conv + bn3 + residual add + relu ----------------------
    h3 = jnp.dot(h2.astype(cdt), w3_ref[...],
                 preferred_element_type=jnp.float32)
    h3 = h3 + b3_ref[...] + x.astype(jnp.float32)           # residual (Cin==Cout)
    o_ref[...] = jnp.maximum(h3, 0.0).reshape(1, h, w, cout).astype(o_ref.dtype)


# ---------------------------- one-time weight prep -------------------------- #

def _fold_bn(gamma, beta, mean, var, eps=1e-5):
    s = gamma / jnp.sqrt(var + eps)
    b = beta - mean * s
    return s.astype(jnp.float32), b.astype(jnp.float32)


def prepare_params(params, num_group, compute_dtype=jnp.float32):
    """Fold BN into conv weights and build the block-diagonal im2col weight.

    Hoisted out of the per-forward path; call once whenever weights change.
    """
    cmid, cin = params["w1"].shape[:2]
    cout = params["w3"].shape[0]
    cg = cmid // num_group

    s1, b1 = _fold_bn(*params["bn1"])
    s2, b2 = _fold_bn(*params["bn2"])
    s3, b3 = _fold_bn(*params["bn3"])

    w1 = params["w1"].reshape(cmid, cin).T * s1[None, :]          # [Cin, Cmid]
    w3 = params["w3"].reshape(cout, cmid).T * s3[None, :]         # [Cmid, Cout]

    # Grouped 3x3 conv [Cmid, Cg, 3, 3] -> tap-major block-diagonal
    # [9*Cmid_in, Cmid_out] (grouped conv == block-diagonal matmul).
    w2 = params["w2"]
    taps = jnp.transpose(w2.reshape(num_group, cg, cg, 3, 3),
                         (3, 4, 0, 2, 1)).reshape(9, num_group, cg, cg)
    eye = jnp.eye(num_group, dtype=w2.dtype)
    bd = jnp.einsum("tgio,gh->tgiho", taps, eye).reshape(9, cmid, cmid)
    w2_flat = (bd * s2[None, None, :]).reshape(9 * cmid, cmid)

    cdt = compute_dtype
    return dict(
        w1=w1.astype(cdt), b1=b1.reshape(1, cmid),
        w2=w2_flat.astype(cdt), b2=b2.reshape(1, cmid),
        w3=w3.astype(cdt), b3=b3.reshape(1, cout),
    )


# -------------------------------- wrapper ----------------------------------- #

def bottleneck_forward(x_nchw, prep, *, vmem_limit_bytes=48 * 1024 * 1024):
    """ResNeXt Bottleneck forward (stride=1, downsample=None). Input NCHW."""
    n, cin, hh, ww = x_nchw.shape
    cmid = prep["b1"].shape[1]
    cout = prep["b3"].shape[1]
    assert cin == cout, "identity residual requires inplanes == planes*expansion"

    # Layout glue: kernel works channels-last. In a full network keep the
    # model NHWC end-to-end so these transposes disappear.
    x_nhwc = jnp.transpose(x_nchw, (0, 2, 3, 1))

    flops = 2 * n * hh * ww * (cin * cmid + 9 * cmid * cmid + cmid * cout)
    bytes_accessed = 4 * (x_nhwc.size + n * hh * ww * cout) + sum(
        int(v.size) * v.dtype.itemsize for v in prep.values())

    out_nhwc = pl.pallas_call(
        _bottleneck_kernel,
        out_shape=jax.ShapeDtypeStruct((n, hh, ww, cout), jnp.float32),
        grid_spec=pltpu.PrefetchScalarGridSpec(
            num_scalar_prefetch=0,
            grid=(n,),
            in_specs=[
                pl.BlockSpec((1, hh, ww, cin), lambda i: (i, 0, 0, 0)),
                pl.BlockSpec((cin, cmid), lambda i: (0, 0)),       # fetched once
                pl.BlockSpec((1, cmid), lambda i: (0, 0)),
                pl.BlockSpec((9 * cmid, cmid), lambda i: (0, 0)),
                pl.BlockSpec((1, cmid), lambda i: (0, 0)),
                pl.BlockSpec((cmid, cout), lambda i: (0, 0)),
                pl.BlockSpec((1, cout), lambda i: (0, 0)),
            ],
            out_specs=pl.BlockSpec((1, hh, ww, cout), lambda i: (i, 0, 0, 0)),
        ),
        compiler_params=pltpu.CompilerParams(
            dimension_semantics=("parallel",),
            vmem_limit_bytes=vmem_limit_bytes,
        ),
        cost_estimate=pl.CostEstimate(
            flops=flops, transcendentals=0, bytes_accessed=bytes_accessed),
    )(x_nhwc, prep["w1"], prep["b1"], prep["w2"], prep["b2"],
      prep["w3"], prep["b3"])

    return jnp.transpose(out_nhwc, (0, 3, 1, 2))


# --------------------------- plain-JAX reference ---------------------------- #

def reference_forward(x, params, num_group):
    dn = ("NCHW", "OIHW", "NCHW")

    def bn(y, p):
        gamma, beta, mean, var = p
        s = gamma / jnp.sqrt(var + 1e-5)
        return y * s[None, :, None, None] + (beta - mean * s)[None, :, None, None]

    out = lax.conv_general_dilated(x, params["w1"], (1, 1), "VALID",
                                   dimension_numbers=dn)
    out = jax.nn.relu(bn(out, params["bn1"]))
    out = lax.conv_general_dilated(out, params["w2"], (1, 1),
                                   ((1, 1), (1, 1)), dimension_numbers=dn,
                                   feature_group_count=num_group)
    out = jax.nn.relu(bn(out, params["bn2"]))
    out = lax.conv_general_dilated(out, params["w3"], (1, 1), "VALID",
                                   dimension_numbers=dn)
    out = bn(out, params["bn3"])
    return jax.nn.relu(out + x)


# ----------------------------------- main ------------------------------------ #

if __name__ == "__main__":
    # inplanes == planes * expansion so downsample is None (identity residual),
    # stride=1, num_group=4 divides planes*2=8.
    inplanes, planes, num_group = 16, 4, 4
    n, hh, ww = 2, 16, 16
    cmid, cout = planes * 2, planes * 4          # 8, 16

    key = jax.random.PRNGKey(0)
    ks = jax.random.split(key, 8)

    def bn_params(k, c):
        k1, k2, k3, k4 = jax.random.split(k, 4)
        gamma = 1.0 + 0.1 * jax.random.normal(k1, (c,), jnp.float32)
        beta = 0.1 * jax.random.normal(k2, (c,), jnp.float32)
        mean = 0.1 * jax.random.normal(k3, (c,), jnp.float32)
        var = 1.0 + 0.1 * jax.random.uniform(k4, (c,), jnp.float32)
        return (gamma, beta, mean, var)

    params = {
        "w1": 0.1 * jax.random.normal(ks[0], (cmid, inplanes, 1, 1), jnp.float32),
        "w2": 0.1 * jax.random.normal(ks[1], (cmid, cmid // num_group, 3, 3), jnp.float32),
        "w3": 0.1 * jax.random.normal(ks[2], (cout, cmid, 1, 1), jnp.float32),
        "bn1": bn_params(ks[3], cmid),
        "bn2": bn_params(ks[4], cmid),
        "bn3": bn_params(ks[5], cout),
    }
    x = jax.random.normal(ks[6], (n, inplanes, hh, ww), jnp.float32)

    prep = prepare_params(params, num_group)      # one-time weight prep (hoisted)
    out = jax.block_until_ready(bottleneck_forward(x, prep))

    ref = reference_forward(x, params, num_group)
    assert out.shape == ref.shape, (out.shape, ref.shape)
    if not jnp.allclose(out, ref, rtol=1e-4, atol=1e-4):
        raise AssertionError("Pallas Bottleneck output mismatch vs reference")

    print("KERNEL_OK")
</pallas_src>

<mosaic_0001>
module attributes {stable_mosaic.version = 11 : i64} {
  func.func @_bottleneck_kernel(%arg0: i32, %arg1: memref<1x16x16x16xf32, #tpu.memory_space<vmem>>, %arg2: memref<16x8xf32, #tpu.memory_space<vmem>>, %arg3: memref<1x8xf32, #tpu.memory_space<vmem>>, %arg4: memref<72x8xf32, #tpu.memory_space<vmem>>, %arg5: memref<1x8xf32, #tpu.memory_space<vmem>>, %arg6: memref<8x16xf32, #tpu.memory_space<vmem>>, %arg7: memref<1x16xf32, #tpu.memory_space<vmem>>, %arg8: memref<1x16x16x16xf32, #tpu.memory_space<vmem>>) attributes {dimension_semantics = [#tpu.dimension_semantics<parallel>], iteration_bounds = array<i64: 2>, scalar_prefetch = 0 : i64, scratch_operands = 0 : i64, tpu.core_type = #tpu.core_type<tc>, window_params = [{transform_indices = @transform_0, window_bounds = array<i64: 1, 16, 16, 16>}, {pipeline_mode = #tpu.pipeline_mode<synchronous>, transform_indices = @transform_1, window_bounds = array<i64: 16, 8>}, {pipeline_mode = #tpu.pipeline_mode<synchronous>, transform_indices = @transform_2, window_bounds = array<i64: 1, 8>}, {pipeline_mode = #tpu.pipeline_mode<synchronous>, transform_indices = @transform_3, window_bounds = array<i64: 72, 8>}, {pipeline_mode = #tpu.pipeline_mode<synchronous>, transform_indices = @transform_4, window_bounds = array<i64: 1, 8>}, {pipeline_mode = #tpu.pipeline_mode<synchronous>, transform_indices = @transform_5, window_bounds = array<i64: 8, 16>}, {pipeline_mode = #tpu.pipeline_mode<synchronous>, transform_indices = @transform_6, window_bounds = array<i64: 1, 16>}, {transform_indices = @transform_7, window_bounds = array<i64: 1, 16, 16, 16>}]} {
    %c0 = arith.constant 0 : index
    %c0_0 = arith.constant 0 : index
    %c0_1 = arith.constant 0 : index
    %c0_2 = arith.constant 0 : index
    %0 = vector.load %arg1[%c0, %c0_0, %c0_1, %c0_2] : memref<1x16x16x16xf32, #tpu.memory_space<vmem>>, vector<1x16x16x16xf32>
    %1 = vector.shape_cast %0 : vector<1x16x16x16xf32> to vector<256x16xf32>
    %c0_3 = arith.constant 0 : index
    %c0_4 = arith.constant 0 : index
    %2 = vector.load %arg2[%c0_3, %c0_4] : memref<16x8xf32, #tpu.memory_space<vmem>>, vector<16x8xf32>
    %cst = arith.constant dense<0.000000e+00> : vector<256x8xf32>
    %3 = tpu.matmul %1, %2, %cst {dimension_numbers = #tpu.dot_dimension_numbers<[1], [0], [0], [1], [0, 0, 1, 1], [], []>} : vector<256x16xf32>, vector<16x8xf32>, vector<256x8xf32> -> vector<256x8xf32>
    %c0_5 = arith.constant 0 : index
    %c0_6 = arith.constant 0 : index
    %4 = vector.load %arg3[%c0_5, %c0_6] : memref<1x8xf32, #tpu.memory_space<vmem>>, vector<1x8xf32>
    %5 = vector.broadcast %4 : vector<1x8xf32> to vector<256x8xf32>
    %6 = arith.addf %3, %5 : vector<256x8xf32>
    %cst_7 = arith.constant 0.000000e+00 : f32
    %7 = vector.broadcast %cst_7 : f32 to vector<256x8xf32>
    %8 = arith.maximumf %6, %7 : vector<256x8xf32>
    %9 = vector.shape_cast %8 : vector<256x8xf32> to vector<16x16x8xf32>
    %cst_8 = arith.constant 0.000000e+00 : f32
    %10 = vector.broadcast %cst_8 : f32 to vector<16x1x8xf32>
    %cst_9 = arith.constant 0.000000e+00 : f32
    %11 = vector.broadcast %cst_9 : f32 to vector<1x18x8xf32>
    %12 = tpu.concatenate %10, %9, %10 in 1 : vector<16x1x8xf32>, vector<16x16x8xf32>, vector<16x1x8xf32> -> vector<16x18x8xf32>
    %13 = tpu.concatenate %11, %12, %11 in 0 : vector<1x18x8xf32>, vector<16x18x8xf32>, vector<1x18x8xf32> -> vector<18x18x8xf32>
    %14 = vector.extract_strided_slice %13 {offsets = [0, 0, 0], sizes = [16, 16, 8], strides = [1, 1, 1]} : vector<18x18x8xf32> to vector<16x16x8xf32>
    %15 = vector.shape_cast %14 : vector<16x16x8xf32> to vector<256x8xf32>
    %16 = vector.extract_strided_slice %13 {offsets = [0, 1, 0], sizes = [16, 16, 8], strides = [1, 1, 1]} : vector<18x18x8xf32> to vector<16x16x8xf32>
    %17 = vector.shape_cast %16 : vector<16x16x8xf32> to vector<256x8xf32>
    %18 = vector.extract_strided_slice %13 {offsets = [0, 2, 0], sizes = [16, 16, 8], strides = [1, 1, 1]} : vector<18x18x8xf32> to vector<16x16x8xf32>
    %19 = vector.shape_cast %18 : vector<16x16x8xf32> to vector<256x8xf32>
    %20 = vector.extract_strided_slice %13 {offsets = [1, 0, 0], sizes = [16, 16, 8], strides = [1, 1, 1]} : vector<18x18x8xf32> to vector<16x16x8xf32>
    %21 = vector.shape_cast %20 : vector<16x16x8xf32> to vector<256x8xf32>
    %22 = vector.extract_strided_slice %13 {offsets = [1, 1, 0], sizes = [16, 16, 8], strides = [1, 1, 1]} : vector<18x18x8xf32> to vector<16x16x8xf32>
    %23 = vector.shape_cast %22 : vector<16x16x8xf32> to vector<256x8xf32>
    %24 = vector.extract_strided_slice %13 {offsets = [1, 2, 0], sizes = [16, 16, 8], strides = [1, 1, 1]} : vector<18x18x8xf32> to vector<16x16x8xf32>
    %25 = vector.shape_cast %24 : vector<16x16x8xf32> to vector<256x8xf32>
    %26 = vector.extract_strided_slice %13 {offsets = [2, 0, 0], sizes = [16, 16, 8], strides = [1, 1, 1]} : vector<18x18x8xf32> to vector<16x16x8xf32>
    %27 = vector.shape_cast %26 : vector<16x16x8xf32> to vector<256x8xf32>
    %28 = vector.extract_strided_slice %13 {offsets = [2, 1, 0], sizes = [16, 16, 8], strides = [1, 1, 1]} : vector<18x18x8xf32> to vector<16x16x8xf32>
    %29 = vector.shape_cast %28 : vector<16x16x8xf32> to vector<256x8xf32>
    %30 = vector.extract_strided_slice %13 {offsets = [2, 2, 0], sizes = [16, 16, 8], strides = [1, 1, 1]} : vector<18x18x8xf32> to vector<16x16x8xf32>
    %31 = vector.shape_cast %30 : vector<16x16x8xf32> to vector<256x8xf32>
    %32 = tpu.concatenate %15, %17, %19, %21, %23, %25, %27, %29, %31 in 1 : vector<256x8xf32>, vector<256x8xf32>, vector<256x8xf32>, vector<256x8xf32>, vector<256x8xf32>, vector<256x8xf32>, vector<256x8xf32>, vector<256x8xf32>, vector<256x8xf32> -> vector<256x72xf32>
    %c0_10 = arith.constant 0 : index
    %c0_11 = arith.constant 0 : index
    %33 = vector.load %arg4[%c0_10, %c0_11] : memref<72x8xf32, #tpu.memory_space<vmem>>, vector<72x8xf32>
    %cst_12 = arith.constant dense<0.000000e+00> : vector<256x8xf32>
    %34 = tpu.matmul %32, %33, %cst_12 {dimension_numbers = #tpu.dot_dimension_numbers<[1], [0], [0], [1], [0, 0, 1, 1], [], []>} : vector<256x72xf32>, vector<72x8xf32>, vector<256x8xf32> -> vector<256x8xf32>
    %c0_13 = arith.constant 0 : index
    %c0_14 = arith.constant 0 : index
    %35 = vector.load %arg5[%c0_13, %c0_14] : memref<1x8xf32, #tpu.memory_space<vmem>>, vector<1x8xf32>
    %36 = vector.broadcast %35 : vector<1x8xf32> to vector<256x8xf32>
    %37 = arith.addf %34, %36 : vector<256x8xf32>
    %cst_15 = arith.constant 0.000000e+00 : f32
    %38 = vector.broadcast %cst_15 : f32 to vector<256x8xf32>
    %39 = arith.maximumf %37, %38 : vector<256x8xf32>
    %c0_16 = arith.constant 0 : index
    %c0_17 = arith.constant 0 : index
    %40 = vector.load %arg6[%c0_16, %c0_17] : memref<8x16xf32, #tpu.memory_space<vmem>>, vector<8x16xf32>
    %cst_18 = arith.constant dense<0.000000e+00> : vector<256x16xf32>
    %41 = tpu.matmul %39, %40, %cst_18 {dimension_numbers = #tpu.dot_dimension_numbers<[1], [0], [0], [1], [0, 0, 1, 1], [], []>} : vector<256x8xf32>, vector<8x16xf32>, vector<256x16xf32> -> vector<256x16xf32>
    %c0_19 = arith.constant 0 : index
    %c0_20 = arith.constant 0 : index
    %42 = vector.load %arg7[%c0_19, %c0_20] : memref<1x16xf32, #tpu.memory_space<vmem>>, vector<1x16xf32>
    %43 = vector.broadcast %42 : vector<1x16xf32> to vector<256x16xf32>
    %44 = arith.addf %41, %43 : vector<256x16xf32>
    %45 = arith.addf %44, %1 : vector<256x16xf32>
    %cst_21 = arith.constant 0.000000e+00 : f32
    %46 = vector.broadcast %cst_21 : f32 to vector<256x16xf32>
    %47 = arith.maximumf %45, %46 : vector<256x16xf32>
    %48 = vector.shape_cast %47 : vector<256x16xf32> to vector<1x16x16x16xf32>
    %c0_22 = arith.constant 0 : index
    %c0_23 = arith.constant 0 : index
    %c0_24 = arith.constant 0 : index
    %c0_25 = arith.constant 0 : index
    %49 = vector.load %arg8[%c0_22, %c0_23, %c0_24, %c0_25] : memref<1x16x16x16xf32, #tpu.memory_space<vmem>>, vector<1x16x16x16xf32>
    tpu.vector_store %arg8[%c0_22, %c0_23, %c0_24, %c0_25], %48 {strides = array<i32>} : memref<1x16x16x16xf32, #tpu.memory_space<vmem>>, vector<1x16x16x16xf32>,
    return
  }
  func.func @transform_0(%arg0: i32) -> (i32, i32, i32, i32) {
    %c0_i32 = arith.constant 0 : i32
    %c0_i32_0 = arith.constant 0 : i32
    %c0_i32_1 = arith.constant 0 : i32
    %c0_i32_2 = arith.constant 0 : i32
    return %arg0, %c0_i32, %c0_i32_0, %c0_i32_1 : i32, i32, i32, i32
  }
  func.func @transform_1(%arg0: i32) -> (i32, i32) {
    %c0_i32 = arith.constant 0 : i32
    %c0_i32_0 = arith.constant 0 : i32
    %c0_i32_1 = arith.constant 0 : i32
    return %c0_i32, %c0_i32_0 : i32, i32
  }
  func.func @transform_2(%arg0: i32) -> (i32, i32) {
    %c0_i32 = arith.constant 0 : i32
    %c0_i32_0 = arith.constant 0 : i32
    %c0_i32_1 = arith.constant 0 : i32
    return %c0_i32, %c0_i32_0 : i32, i32
  }
  func.func @transform_3(%arg0: i32) -> (i32, i32) {
    %c0_i32 = arith.constant 0 : i32
    %c0_i32_0 = arith.constant 0 : i32
    %c0_i32_1 = arith.constant 0 : i32
    return %c0_i32, %c0_i32_0 : i32, i32
  }
  func.func @transform_4(%arg0: i32) -> (i32, i32) {
    %c0_i32 = arith.constant 0 : i32
    %c0_i32_0 = arith.constant 0 : i32
    %c0_i32_1 = arith.constant 0 : i32
    return %c0_i32, %c0_i32_0 : i32, i32
  }
  func.func @transform_5(%arg0: i32) -> (i32, i32) {
    %c0_i32 = arith.constant 0 : i32
    %c0_i32_0 = arith.constant 0 : i32
    %c0_i32_1 = arith.constant 0 : i32
    return %c0_i32, %c0_i32_0 : i32, i32
  }
  func.func @transform_6(%arg0: i32) -> (i32, i32) {
    %c0_i32 = arith.constant 0 : i32
    %c0_i32_0 = arith.constant 0 : i32
    %c0_i32_1 = arith.constant 0 : i32
    return %c0_i32, %c0_i32_0 : i32, i32
  }
  func.func @transform_7(%arg0: i32) -> (i32, i32, i32, i32) {
    %c0_i32 = arith.constant 0 : i32
    %c0_i32_0 = arith.constant 0 : i32
    %c0_i32_1 = arith.constant 0 : i32
    %c0_i32_2 = arith.constant 0 : i32
    return %arg0, %c0_i32, %c0_i32_0, %c0_i32_1 : i32, i32, i32, i32
  }
}

</mosaic_0001>

<bundles_post_ra>
// kernel: tpu_custom_call.1
= control target key start
LH: loop header
LB: loop body
LE: loop exit
PB: predicated region body
PF: predicated region fallthrough
CT: control target
= control target key end

     0   :  { %12 = vsyncpa [#allocation3], 0  ;;  %s4902_s0 = inlined_call_operand.hbm [shape: f32[2,16,16,16], index: 0, kind: input, shape index: {}]   ;;  %s4903_s1 = inlined_call_operand.vmem [shape: f32[16,8], index: 1, kind: input, shape index: {}]   ;;  %s4904_s2 = inlined_call_operand.vmem [shape: f32[1,8], index: 2, kind: input, shape index: {}]   ;;  %s4905_s3 = inlined_call_operand.vmem [shape: f32[72,8], index: 3, kind: input, shape index: {}]   ;;  %s4906_s4 = inlined_call_operand.vmem [shape: f32[1,8], index: 4, kind: input, shape index: {}]   ;;  %s4907_s5 = inlined_call_operand.vmem [shape: f32[8,16], index: 5, kind: input, shape index: {}]   ;;  %s4908_s6 = inlined_call_operand.vmem [shape: f32[1,16], index: 6, kind: input, shape index: {}]   ;;  %s4909_s7 = inlined_call_operand.hbm [shape: f32[2,16,16,16], index: 7, kind: output, shape index: {}]  }
   0x1   :  { %14 = vsyncpa [#allocation3 + $0x1], 0 }
   0x2   :  { %15 = vsyncpa [#allocation4], 0 }
   0x3   :  { %17 = vsyncpa [#allocation4 + $0x1], 0  ;;  %s2976_s24 = smov 0   ;;  %s2978_s25 = smov 0  }
   0x4   :  { %s2980_s26 = smov 0   ;;  %s2982_s27 = smov 0  }
   0x5 LB: > { %s2997_s28 = sadd.s32 4294967295, %s2922_s27   ;;  %s2606_s29 = sadd.s32 4294967294, %s2922_s27   ;;  %s2922_s27 = sphi %s2982_s27, %s5087_s27   ;;  %s2918_s26 = sphi %s2980_s26, %s5086_s26   ;;  %s2914_s25 = sphi %s2978_s25, %s5085_s25   ;;  %s2910_s24 = sphi %s2976_s24, %s5084_s24  }
   0x6   : > { %s3001_s30 = sadd.s32 1, %s2922_s27   ;;  %s30_s8 = sadd.s32 1, %s2918_s26 }
   0x7   : > { %s27_s9 = ssub.s32 %s2922_s27, %s3001_s30  ;;  %p37_p0 = scmp.ne.s32.totalorder %s2918_s26, %s2914_s25 }
   0x8   : > { %p28_p1 = scmp.eq.s32.totalorder %s27_s9, 0  ;;  %p38_p2 = scmp.eq.s32.totalorder %s2922_s27, 0 }
   0x9   : > { %p43_p3 = scmp.ne.s32.totalorder %s2914_s25, %s2910_s24  ;;  %p44_p4 = scmp.eq.s32.totalorder %s2997_s28, 0 }
   0xa   : > { %s3013_s10 = scalar_select %p28_p1, %s2918_s26, %s30_s8  }
   0xb   : > { %p3015_p5 = por %p38_p2, %p37_p0  ;;  %p3019_p6 = por %p44_p4, %p43_p3 }
   0xc   : > { %4967 = sst [smem:[#allocation8_spill]] %s3013_s10  ;;  %p193_p7 = scmp.eq.s32.totalorder %s2997_s28, 1 }
   0xd   : > { %p199_p8 = scmp.eq.s32.totalorder %s2606_s29, 1  ;;  %p2742_p10 = scmp.lt.s32.totalorder %s2922_s27, 2 }
   0xe   : > { %p3026_p11 = por %p193_p7, %p37_p0  ;;  %s237_s15 = sand.u32 1, %s2918_s26  }
   0xf   : > { %p3030_p12 = por %p199_p8, %p43_p3  ;;  %s2716_s16 = sshll.u32 %s2922_s27, 8 }
  0x10   : > { %s2609_s17 = sshll.u32 %s237_s15, 8  ;;  %s246_s20 = scalar_lea.hbm %s4902_s0, %s2716_s16 }
  0x11   : > { %s247_s21 = sshll.u32 %s246_s20, 4  ;;  %s241_s22 = scalar_lea.vmem [#allocation2], %s2609_s17  ;;  %s248_s21 = int_to_ptr.hbm [resolvable:$true] %s247_s21 }
  0x12   : > { %s249_s23 = sshll.u32 %s241_s22, 4  ;;  %p3041_p13 = pnand %p2742_p10, %p3015_p5  ;;  %s250_s23 = int_to_ptr.vmem [resolvable:$true] %s249_s23 }
  0x13   : > { %p2612_p0 = scmp.ge.s32.totalorder %s2922_s27, 1  ;;  %p257_p1 = scmp.lt.s32.totalorder %s2922_s27, 3 }
  0x14   : > { %s238_s8 = scalar_lea.sflag [#allocation3], %s237_s15  ;;  %s2826_s9 = sshra.s32 %s248_s21, 4  ;;  %s2827_s9 = int_to_ptr.hbm [resolvable:$true] %s2826_s9 }
  0x15   : > { %s2828_s10 = scalar_lea.hbm %s2827_s9, 256  ;;  %p2830_p3 = pneg %p3041_p13 }
  0x16   : > { %p2829_p2 = scmp.ne.s32.totalorder %s2827_s9, %s2828_s10  ;;  %s2833_s11 = scalar_lea.hbm %s4902_s0, 512 }
  0x17   : > { %p2834_p5 = scmp.lt.s32.totalorder %s2827_s9, %s4902_s0  ;;  %p2835_p8 = scmp.lt.s32.totalorder %s2833_s11, %s2828_s10 }
  0x18   : > { %p2831_p4 = pnand %p2830_p3, %p2829_p2 }
  0x19   : > { %p2836_p10 = por %p2835_p8, %p2834_p5 }
  0x1a   : > { %p2832_p7 = pneg %p2831_p4 }
  0x1c   : > { %p2837_p9 = pnand %p2836_p10, %p2832_p7 }
  0x1e   : > { %2840 = shalt.err (!%p2837_p9)
}
  0x1f   : > { %s2924_s15 = smov 128   ;;  %s2925_s20 = smov 8  }
  0x20   : > { %2737 = dma.hbm_to_vmem [thread:$0]  (!%p3041_p13), %s248_s21, 4096, %s250_s23, %s238_s8, %s2924_s15, %s2924_s15, %s2925_s20  }
  0x21   : > { %p258_p2 = pnand %p2612_p0, %p257_p1 }
  0x23   : > { %261 = sbr.rel (%p258_p2) target bundleno = 1246 (0x4de), region = 48 }
  0x28   : > { %s3062_s22 = sand.u32 1, %s2914_s25  }
  0x29   : > { %s4910_s10 = sshll.u32 %s3062_s22, 8  ;;  %s264_s9 = scalar_lea.sflag [#allocation3], %s3062_s22 }
  0x2a   : > { %s3068_s16 = scalar_lea.vmem [#allocation2], %s4910_s10 }
  0x2b   : > { %2901 = dma.done.wait (%p3019_p6), %s264_s9, 4096  }
  0x2c   : > { %2903 = vsyncadd (%p3019_p6), %s264_s9, 4294963200  ;;  %v332_v0 = vld [vmem:[%s4903_s1 + $0x8] sm:$0xff]  ;;  %v331_v1 = vld [vmem:[%s4903_s1] sm:$0xff]  ;;  %vm337_vm0 = vcmask 130048   ;;  %v4913_v17 = vmov 0.0   ;;  %s2927_s12 = smov 8  }
  0x2d   : > { %448 = vmatpush.msra.mxu0 %v332_v0  ;;  %v299_v2 = vld [vmem:[%s3068_s16] sm:$0xff]  ;;  %2718 = vmatpush.msra.mxu3 %v332_v0  ;;  %v324_v3 = vld [vmem:[%s3068_s16 + $0xc8] sm:$0xff]  ;;  %v325_v5 = vld [vmem:[%s3068_s16 + $0xd0] sm:$0xff]  ;;  %v3111_v18 = vrot.slane %v4913_v17, 1  ;;  %v3114_v19 = vrot.slane %v4913_v17, 2  ;;  %s2928_s17 = smov 16  }
  0x2e   : > { %v300_v4 = vld [vmem:[%s3068_s16 + $0x8] sm:$0xff]  ;;  %v301_v6 = vld [vmem:[%s3068_s16 + $0x10] sm:$0xff]  ;;  %v326_v7 = vld [vmem:[%s3068_s16 + $0xd8] sm:$0xff]  ;;  %vm611_vm1 = vcmask 1040384   ;;  %s2929_s19 = smov 24   ;;  %vm848_vm2 = vcmask 1045504  }
  0x2f   : > { %449 = vmatpush.msra.mxu0 %v331_v1  ;;  %2719 = vmatpush.msra.mxu3 %v331_v1  ;;  %v302_v8 = vld [vmem:[%s3068_s16 + $0x18] sm:$0xff]  ;;  %v303_v9 = vld [vmem:[%s3068_s16 + $0x20] sm:$0xff]  ;;  %v304_v11 = vld [vmem:[%s3068_s16 + $0x28] sm:$0xff]  ;;  %4973 = vst [vmem:[#allocation9_spill] sm:$0xff] %v3111_v18  ;;  %vm770_vm3 = vcmask 1046528   ;;  %s2930_s15 = smov 32  }
  0x30   : > { %2615 = vmatmul.msk.f32.vlgmr.msra.gmra.mxu0 %vm337_vm0, %v299_v2  ;;  %2640 = vmatmul.msk.f32.vlgmr.msra.gmra.mxu3 %vm337_vm0, %v324_v3  ;;  %v327_v10 = vld [vmem:[%s3068_s16 + $0xe0] sm:$0xff]  ;;  %v328_v12 = vld [vmem:[%s3068_s16 + $0xe8] sm:$0xff]  ;;  %v305_v13 = vld [vmem:[%s3068_s16 + $0x30] sm:$0xff]  ;;  %4974 = vst [vmem:[#allocation10_spill] sm:$0xff] %v3114_v19  ;;  %s2931_s20 = smov 40   ;;  %s2932_s9 = smov 48  }
  0x31   : > { %v306_v14 = vld [vmem:[%s3068_s16 + $0x38] sm:$0xff]  ;;  %v307_v15 = vld [vmem:[%s3068_s16 + $0x40] sm:$0xff]  ;;  %v308_v16 = vld [vmem:[%s3068_s16 + $0x48] sm:$0xff]  ;;  %938 = vrot.lane.b32.xlu0 %v3111_v18, %s2927_s12  ;;  %s4911_s21 = smov 64   ;;  %s2934_s23 = smov 56   ;;  %vm1691_vm4 = vcmask 64512  }
  0x32   : > { %1031 = vrot.lane.b32.xlu1 %v3114_v19, %s2928_s17  ;;  %v309_v20 = vld [vmem:[%s3068_s16 + $0x50] sm:$0xff]  ;;  %v310_v21 = vld [vmem:[%s3068_s16 + $0x58] sm:$0xff]  ;;  %v311_v22 = vld [vmem:[%s3068_s16 + $0x60] sm:$0xff]  ;;  %vm1754_vm5 = vcmask 195584   ;;  %s4991_s8 = smov 64   ;;  %vm1787_vm6 = vcmask 261120  }
  0x33   : > { %v312_v23 = vld [vmem:[%s3068_s16 + $0x68] sm:$0xff]  ;;  %v313_v24 = vld [vmem:[%s3068_s16 + $0x70] sm:$0xff]  ;;  %v314_v25 = vld [vmem:[%s3068_s16 + $0x78] sm:$0xff]  ;;  %vm1853_vm7 = vcmask 392192   ;;  %vm1820_vm8 = vcmask 326656   ;;  %vm1886_vm9 = vcmask 457728  }
  0x34   : > { %v3135_v26 = vld [vmem:[%s4904_s2] ss:$0 sm:$0xff]  ;;  %v316_v34 = vld [vmem:[%s3068_s16 + $0x88] sm:$0xff]  ;;  %v317_v42 = vld [vmem:[%s3068_s16 + $0x90] sm:$0xff]  ;;  %vm1919_vm10 = vcmask 523264   ;;  %vm1965_vm11 = vcmask 588800  }
  0x35   : > { %v315_v28 = vld [vmem:[%s3068_s16 + $0x80] sm:$0xff]  ;;  %v318_v53 = vld [vmem:[%s3068_s16 + $0x98] sm:$0xff]  ;;  %s5027_s18 = sshll.u32 %s3062_s22, 8 }
  0x36   : > { %v319_v63 = vld [vmem:[%s3068_s16 + $0xa0] sm:$0xff] }
  0x38   : > { %2616 = vmatmul.msk.f32.gmra.mxu0 %vm337_vm0, %v300_v4  ;;  %2641 = vmatmul.msk.f32.gmra.mxu3 %vm337_vm0, %v325_v5 }
  0x40   : > { %2617 = vmatmul.msk.f32.gmra.mxu0 %vm337_vm0, %v301_v6  ;;  %2642 = vmatmul.msk.f32.gmra.mxu3 %vm337_vm0, %v326_v7  ;;  %v320_v7 = vld [vmem:[%s3068_s16 + $0xa8] sm:$0xff] }
  0x48   : > { %2618 = vmatmul.msk.f32.gmra.mxu0 %vm337_vm0, %v302_v8  ;;  %2643 = vmatmul.msk.f32.gmra.mxu3 %vm337_vm0, %v327_v10 }
  0x50   : > { %2619 = vmatmul.msk.f32.gmra.mxu0 %vm337_vm0, %v303_v9  ;;  %2644 = vmatmul.msk.f32.gmra.mxu3 %vm337_vm0, %v328_v12 }
  0x58   : > { %2620 = vmatmul.msk.f32.gmra.mxu0 %vm337_vm0, %v304_v11 }
  0x60   : > { %2621 = vmatmul.msk.f32.gmra.mxu0 %vm337_vm0, %v305_v13 }
  0x68   : > { %2622 = vmatmul.msk.f32.gmra.mxu0 %vm337_vm0, %v306_v14 }
  0x70   : > { %2623 = vmatmul.msk.f32.gmra.mxu0 %vm337_vm0, %v307_v15 }
  0x78   : > { %2624 = vmatmul.msk.f32.gmra.mxu0 %vm337_vm0, %v308_v16  ;;  %v321_v16 = vld [vmem:[%s3068_s16 + $0xb0] sm:$0xff] }
  0x80   : > { %2625 = vmatmul.msk.f32.gmra.mxu0 %vm337_vm0, %v309_v20 }
  0x88   : > { %2626 = vmatmul.msk.f32.gmra.mxu0 %vm337_vm0, %v310_v21 }
  0x90   : > { %2627 = vmatmul.msk.f32.gmra.mxu0 %vm337_vm0, %v311_v22 }
  0x98   : > { %2628 = vmatmul.msk.f32.gmra.mxu0 %vm337_vm0, %v312_v23 }
  0xa0   : > { %2629 = vmatmul.msk.f32.gmra.mxu0 %vm337_vm0, %v313_v24 }
  0xa8   : > { %2630 = vmatmul.msk.f32.gmra.mxu0 %vm337_vm0, %v314_v25 }
  0xad   : > { %v451_v27 = vpop.f32.mrf.mxu0 }
  0xae   : > { %v452_v29 = vadd.f32 %v3135_v26, %v451_v27 }
  0xb0   : > { %v547_v30 = vmax.f32 %v452_v29, 0.0  ;;  %2631 = vmatmul.msk.f32.gmra.mxu0 %vm337_vm0, %v315_v28  ;;  %v322_v29 = vld [vmem:[%s3068_s16 + $0xb8] sm:$0xff] }
  0xb2   : > { %v612_v31 = vrot.slane %v547_v30, 7 }
  0xb3   : > { %v3146_v35 = vpop.f32.mrf.mxu3 }
  0xb4   : > { %v3141_v32 = vsel %vm611_vm1, 0.0, %v612_v31 }
  0xb5   : > { %v454_v33 = vpop.f32.mrf.mxu0  ;;  %1124 = vrot.lane.b32.xlu2 %v3141_v32, %s2929_s19  ;;  %v851_v43 = vrot.slane %v3141_v32, 2  ;;  %v773_v51 = vrot.slane %v3141_v32, 1 }
  0xb6   : > { %v455_v36 = vadd.f32 %v3135_v26, %v454_v33 }
  0xb8   : > { %v548_v37 = vmax.f32 %v455_v36, 0.0  ;;  %2632 = vmatmul.msk.f32.gmra.mxu0 %vm337_vm0, %v316_v34 }
  0xba   : > { %v613_v38 = vrot.slane %v548_v37, 7 }
  0xbb   : > { %v529_v48 = vpop.f32.mrf.mxu3 }
  0xbc   : > { %v723_v39 = vsel %vm611_vm1, %v613_v38, 0.0  ;;  %v3152_v40 = vsel %vm611_vm1, %v612_v31, %v613_v38  ;;  %v530_v60 = vadd.f32 %v3135_v26, %v529_v48 }
  0xbd   : > { %v776_v41 = vrot.slane %v723_v39, 1  ;;  %1126 = vrot.lane.b32.xlu0 %v3152_v40, %s2929_s19  ;;  %v852_v44 = vrot.slane %v3152_v40, 2  ;;  %v774_v45 = vrot.slane %v3152_v40, 1  ;;  %v457_v49 = vpop.f32.mrf.mxu0  ;;  %v854_v55 = vrot.slane %v723_v39, 2 }
  0xbe   : > { %v458_v50 = vadd.f32 %v3135_v26, %v457_v49  ;;  %v573_v2 = vmax.f32 %v530_v60, 0.0 }
  0xbf   : > { %v853_v46 = vsel %vm848_vm2, %v851_v43, %v852_v44  ;;  %v777_v47 = vsel %vm770_vm3, %v774_v45, %v776_v41  ;;  %v775_v52 = vsel %vm770_vm3, %v773_v51, %v774_v45  ;;  %v855_v62 = vsel %vm848_vm2, %v852_v44, %v854_v55  ;;  %v323_v41 = vld [vmem:[%s3068_s16 + $0xc0] sm:$0xff] }
  0xc0   : > { %2633 = vmatmul.msk.f32.gmra.mxu0 %vm337_vm0, %v317_v42  ;;  %1033 = vrot.lane.b32.xlu2 %v853_v46, %s2928_s17  ;;  %v549_v54 = vmax.f32 %v458_v50, 0.0  ;;  %v651_v5 = vrot.slane %v573_v2, 7 }
  0xc1   : > { %942 = vrot.lane.b32.xlu1 %v777_v47, %s2927_s12 }
  0xc2   : > { %v615_v57 = vrot.slane %v549_v54, 7  ;;  %v3203_v15 = vsel %vm611_vm1, 0.0, %v651_v5 }
  0xc3   : > { %v532_v56 = vpop.f32.mrf.mxu3  ;;  %4976 = vst [vmem:[#allocation12_spill] sm:$0xff] %v3203_v15  ;;  %v838_v23 = vrot.slane %v3203_v15, 1  ;;  %v916_v28 = vrot.slane %v3203_v15, 2 }
  0xc4   : > { %v533_v61 = vadd.f32 %v3135_v26, %v532_v56  ;;  %v3180_v0 = vsel %vm611_vm1, 0.0, %v615_v57 }
  0xc5   : > { %940 = vrot.lane.b32.xlu0 %v775_v52, %s2927_s12  ;;  %v460_v58 = vpop.f32.mrf.mxu0  ;;  %v856_v33 = vrot.slane %v3180_v0, 2  ;;  %v778_v38 = vrot.slane %v3180_v0, 1 }
  0xc6   : > { %v461_v59 = vadd.f32 %v3135_v26, %v460_v58  ;;  %v574_v3 = vmax.f32 %v533_v61, 0.0 }
  0xc8   : > { %2634 = vmatmul.msk.f32.gmra.mxu0 %vm337_vm0, %v318_v53  ;;  %1220 = vrot.lane.b32.xlu2 %v775_v52, %s2930_s15  ;;  %v550_v1 = vmax.f32 %v461_v59, 0.0  ;;  %v652_v6 = vrot.slane %v574_v3, 7 }
  0xc9   : > { %1222 = vrot.lane.b32.xlu1 %v777_v47, %s2930_s15 }
  0xca   : > { %v616_v4 = vrot.slane %v550_v1, 7  ;;  %v3192_v9 = vsel %vm611_vm1, %v651_v5, %v652_v6  ;;  %v736_v10 = vsel %vm611_vm1, %v652_v6, 0.0 }
  0xcb   : > { %4975 = vst [vmem:[#allocation11_spill] sm:$0xff] %v3192_v9  ;;  %v919_v11 = vrot.slane %v736_v10, 2  ;;  %v917_v12 = vrot.slane %v3192_v9, 2  ;;  %v841_v13 = vrot.slane %v736_v10, 1  ;;  %v839_v14 = vrot.slane %v3192_v9, 1  ;;  %v535_v39 = vpop.f32.mrf.mxu3 }
  0xcc   : > { %v3189_v8 = vsel %vm611_vm1, %v615_v57, %v616_v4  ;;  %v724_v21 = vsel %vm611_vm1, %v616_v4, 0.0  ;;  %v536_v47 = vadd.f32 %v3135_v26, %v535_v39 }
  0xcd   : > { %1035 = vrot.lane.b32.xlu0 %v855_v62, %s2928_s17  ;;  %v3209_v20 = vsel %vm848_vm2, %v917_v12, %v919_v11  ;;  %v3214_v22 = vsel %vm770_vm3, %v839_v14, %v841_v13  ;;  %v781_v24 = vrot.slane %v724_v21, 1  ;;  %v779_v25 = vrot.slane %v3189_v8, 1  ;;  %v463_v44 = vpop.f32.mrf.mxu0 }
  0xce   : > { %4977 = vst [vmem:[#allocation13_spill] sm:$0xff] %v3209_v20  ;;  %v3223_v27 = vsel %vm770_vm3, %v838_v23, %v839_v14  ;;  %v3232_v31 = vsel %vm848_vm2, %v916_v28, %v917_v12  ;;  %v857_v34 = vrot.slane %v3189_v8, 2  ;;  %v859_v36 = vrot.slane %v724_v21, 2 }
  0xcf   : > { %4978 = vst [vmem:[#allocation14_spill] sm:$0xff] %v3214_v22  ;;  %v782_v30 = vsel %vm770_vm3, %v779_v25, %v781_v24  ;;  %v780_v43 = vsel %vm770_vm3, %v778_v38, %v779_v25  ;;  %v464_v45 = vadd.f32 %v3135_v26, %v463_v44  ;;  %v575_v50 = vmax.f32 %v536_v47, 0.0 }
  0xd0   : > { %2635 = vmatmul.msk.f32.gmra.mxu0 %vm337_vm0, %v319_v63  ;;  %1318 = vrot.lane.b32.xlu2 %v855_v62, %s2931_s20  ;;  %4979 = vst [vmem:[#allocation15_spill] sm:$0xff] %v3223_v27  ;;  %v858_v37 = vsel %vm848_vm2, %v856_v33, %v857_v34  ;;  %v860_v42 = vsel %vm848_vm2, %v857_v34, %v859_v36 }
  0xd1   : > { %1128 = vrot.lane.b32.xlu1 %v3180_v0, %s2929_s19  ;;  %4980 = vst [vmem:[#allocation16_spill] sm:$0xff] %v3232_v31  ;;  %v551_v49 = vmax.f32 %v464_v45, 0.0  ;;  %v654_v53 = vrot.slane %v575_v50, 7  ;;  %v1959_v50 = vld [vmem:[%s4905_s3 + $0x38] sm:$0xff] }
  0xd3   : > { %v618_v52 = vrot.slane %v551_v49, 7  ;;  %v3274_v2 = vsel %vm611_vm1, 0.0, %v654_v53 }
  0xd4   : > { %4983 = vst [vmem:[#allocation19_spill] sm:$0xff] %v3274_v2  ;;  %v921_v4 = vrot.slane %v3274_v2, 2 }
  0xd5   : > { %1316 = vrot.lane.b32.xlu0 %v853_v46, %s2931_s20  ;;  %v538_v46 = vpop.f32.mrf.mxu3  ;;  %v3258_v55 = vsel %vm611_vm1, 0.0, %v618_v52  ;;  %v466_v56 = vpop.f32.mrf.mxu0 }
  0xd6   : > { %v539_v48 = vadd.f32 %v3135_v26, %v538_v46  ;;  %v467_v57 = vadd.f32 %v3135_v26, %v466_v56  ;;  %v783_v21 = vrot.slane %v3258_v55, 1  ;;  %v1960_v46 = vld [vmem:[%s4905_s3 + $0x40] sm:$0xff]  ;;  %v1957_v56 = vld [vmem:[%s4905_s3 + $0x28] sm:$0xff] }
  0xd7   : > { %2069 = vmatpush.msra.mxu1 %v1960_v46  ;;  %2720 = vmatpush.msrb.mxu3 %v1960_v46 }
  0xd8   : > { %2636 = vmatmul.msk.f32.gmra.mxu0 %vm337_vm0, %v320_v7  ;;  %1130 = vrot.lane.b32.xlu2 %v3189_v8, %s2929_s19  ;;  %v576_v51 = vmax.f32 %v539_v48, 0.0  ;;  %v552_v60 = vmax.f32 %v467_v57, 0.0  ;;  %v843_v7 = vrot.slane %v3274_v2, 1 }
  0xd9   : > { %1412 = vrot.lane.b32.xlu1 %v3180_v0, %s2932_s9  ;;  %2070 = vmatpush.msra.mxu1 %v1959_v50 }
  0xda   : > { %v655_v54 = vrot.slane %v576_v51, 7  ;;  %v619_v63 = vrot.slane %v552_v60, 7  ;;  %2721 = vmatpush.msrb.mxu3 %v1959_v50  ;;  %v1956_v60 = vld [vmem:[%s4905_s3 + $0x20] sm:$0xff] }
  0xdc   : > { %v3262_v58 = vsel %vm611_vm1, %v654_v53, %v655_v54  ;;  %v737_v59 = vsel %vm611_vm1, %v655_v54, 0.0  ;;  %v3279_v3 = vsel %vm611_vm1, %v618_v52, %v619_v63  ;;  %v725_v11 = vsel %vm611_vm1, %v619_v63, 0.0  ;;  %v1958_v53 = vld [vmem:[%s4905_s3 + $0x30] sm:$0xff] }
  0xdd   : > { %1414 = vrot.lane.b32.xlu0 %v3189_v8, %s2932_s9  ;;  %4981 = vst [vmem:[#allocation17_spill] sm:$0xff] %v3262_v58  ;;  %v846_v61 = vrot.slane %v737_v59, 1  ;;  %v844_v62 = vrot.slane %v3262_v58, 1  ;;  %v922_v5 = vrot.slane %v3262_v58, 2  ;;  %v786_v13 = vrot.slane %v725_v11, 1  ;;  %v469_v38 = vpop.f32.mrf.mxu0  ;;  %2071 = vmatpush.msra.mxu1 %v1958_v53 }
  0xde   : > { %v784_v14 = vrot.slane %v3279_v3, 1  ;;  %v924_v23 = vrot.slane %v737_v59, 2  ;;  %v864_v34 = vrot.slane %v725_v11, 2  ;;  %2722 = vmatpush.msrb.mxu3 %v1958_v53 }
  0xdf   : > { %v3271_v1 = vsel %vm770_vm3, %v844_v62, %v846_v61  ;;  %v3291_v10 = vsel %vm848_vm2, %v921_v4, %v922_v5  ;;  %v3297_v12 = vsel %vm770_vm3, %v843_v7, %v844_v62  ;;  %2072 = vmatpush.msra.mxu1 %v1957_v56  ;;  %v1955_v62 = vld [vmem:[%s4905_s3 + $0x18] sm:$0xff]  ;;  %v1953_v7 = vld [vmem:[%s4905_s3 + $0x8] sm:$0xff] }
  0xe0   : > { %2637 = vmatmul.msk.f32.gmra.mxu0 %vm337_vm0, %v321_v16  ;;  %1087 = vrot.lane.b32.xlu2 %v3209_v20, %s2928_s17  ;;  %4982 = vst [vmem:[#allocation18_spill] sm:$0xff] %v3271_v1  ;;  %v787_v24 = vsel %vm770_vm3, %v784_v14, %v786_v13  ;;  %v785_v25 = vsel %vm770_vm3, %v783_v21, %v784_v14  ;;  %v1952_v21 = vld [vmem:[%s4905_s3] sm:$0xff] }
  0xe1   : > { %994 = vrot.lane.b32.xlu1 %v3214_v22, %s2927_s12  ;;  %4984 = vst [vmem:[#allocation20_spill] sm:$0xff] %v3291_v10  ;;  %v3311_v28 = vsel %vm848_vm2, %v922_v5, %v924_v23  ;;  %2723 = vmatpush.msrb.mxu3 %v1957_v56  ;;  %v1954_v5 = vld [vmem:[%s4905_s3 + $0x10] sm:$0xff] }
  0xe2   : > { %4985 = vst [vmem:[#allocation21_spill] sm:$0xff] %v3297_v12  ;;  %2073 = vmatpush.msra.mxu1 %v1956_v60 }
  0xe3   : > { %4986 = vst [vmem:[#allocation22_spill] sm:$0xff] %v3311_v28  ;;  %2724 = vmatpush.msrb.mxu3 %v1956_v60 }
  0xe4   : > { %2074 = vmatpush.msra.mxu1 %v1955_v62 }
  0xe5   : > { %992 = vrot.lane.b32.xlu0 %v3223_v27, %s2927_s12  ;;  %v472_v48 = vpop.f32.mrf.mxu0  ;;  %2725 = vmatpush.msrb.mxu3 %v1955_v62 }
  0xe6   : > { %v473_v51 = vadd.f32 %v3135_v26, %v472_v48  ;;  %2075 = vmatpush.msra.mxu1 %v1954_v5 }
  0xe7   : > { %2726 = vmatpush.msrb.mxu3 %v1954_v5 }
  0xe8   : > { %2638 = vmatmul.msk.f32.gmra.mxu0 %vm337_vm0, %v322_v29  ;;  %946 = vrot.lane.b32.xlu2 %v782_v30, %s2927_s12  ;;  %v861_v29 = vrot.slane %v3258_v55, 2  ;;  %v554_v57 = vmax.f32 %v473_v51, 0.0 }
  0xe9   : > { %1085 = vrot.lane.b32.xlu1 %v3232_v31, %s2928_s17  ;;  %2076 = vmatpush.msra.mxu1 %v1953_v7 }
  0xea   : > { %v622_v63 = vrot.slane %v554_v57, 7  ;;  %2727 = vmatpush.msrb.mxu3 %v1953_v7 }
  0xeb   : > { %2077 = vmatpush.msra.mxu1 %v1952_v21 }
  0xec   : > { %v726_v14 = vsel %vm611_vm1, %v622_v63, 0.0  ;;  %2728 = vmatpush.msrb.mxu3 %v1952_v21 }
  0xed   : > { %1598 = vrot.lane.b32.xlu0 %v858_v37, %s4911_s21  ;;  %v869_v51 = vrot.slane %v726_v14, 2 }
  0xf0   : > { %2639 = vmatmul.msk.f32.gmra.mxu0 %vm337_vm0, %v323_v41  ;;  %1039 = vrot.lane.b32.xlu2 %v860_v42, %s2928_s17  ;;  %v470_v41 = vadd.f32 %v3135_v26, %v469_v38  ;;  %v475_v38 = vpop.f32.mrf.mxu0 }
  0xf1   : > { %944 = vrot.lane.b32.xlu1 %v780_v43, %s2927_s12  ;;  %v476_v7 = vadd.f32 %v3135_v26, %v475_v38 }
  0xf2   : > { %v553_v44 = vmax.f32 %v470_v41, 0.0 }
  0xf4   : > { %v621_v47 = vrot.slane %v553_v44, 7 }
  0xf5   : > { %1224 = vrot.lane.b32.xlu0 %v780_v43, %s2930_s15 }
  0xf6   : > { %v3352_v54 = vsel %vm611_vm1, 0.0, %v621_v47  ;;  %v3383_v13 = vsel %vm611_vm1, %v621_v47, %v622_v63 }
  0xf7   : > { %4988 = vst [vmem:[#allocation24_spill] sm:$0xff] %v3383_v13  ;;  %v866_v46 = vrot.slane %v3352_v54, 2  ;;  %v867_v47 = vrot.slane %v3383_v13, 2 }
  0xf8   : > { %1505 = vrot.lane.b32.xlu2 %v780_v43, %s2934_s23  ;;  %v3330_v43 = vpop.permute.xlu1 %1031  ;;  %v478_v53 = vpop.f32.mrf.mxu0 }
  0xf9   : > { %1037 = vrot.lane.b32.xlu1 %v858_v37, %s2928_s17  ;;  %v868_v50 = vsel %vm848_vm2, %v866_v46, %v867_v47  ;;  %v870_v60 = vsel %vm848_vm2, %v867_v47, %v869_v51  ;;  %v479_v47 = vadd.f32 %v3135_v26, %v478_v53 }
  0xfd   : > { %1322 = vrot.lane.b32.xlu0 %v860_v42, %s2931_s20 }
 0x100   : > { %1600 = vrot.lane.b32.xlu2 %v860_v42, %s4911_s21 }
 0x101   : > { %1507 = vrot.lane.b32.xlu1 %v782_v30, %s2934_s23 }
 0x105   : > { %1132 = vrot.lane.b32.xlu0 %v3258_v55, %s2929_s19 }
 0x108   : > { %1226 = vrot.lane.b32.xlu2 %v782_v30, %s2930_s15  ;;  %v862_v30 = vrot.slane %v3279_v3, 2 }
 0x109   : > { %1320 = vrot.lane.b32.xlu1 %v858_v37, %s2931_s20  ;;  %v3322_v37 = vpop.permute.xlu0 %938 }
 0x10a   : > { %v863_v36 = vsel %vm848_vm2, %v861_v29, %v862_v30  ;;  %v865_v39 = vsel %vm848_vm2, %v862_v30, %v864_v34  ;;  %v789_v29 = vrot.slane %v3383_v13, 1  ;;  %v788_v30 = vrot.slane %v3352_v54, 1 }
 0x10b   : > { %v1692_v62 = vsel %vm1691_vm4, 0.0, %v3322_v37 }
 0x10c   : > { %v1723_v5 = vsel %vm337_vm0, %v1692_v62, %v3330_v43 }
 0x10d   : > { %998 = vrot.lane.b32.xlu0 %v3271_v1, %s2927_s12 }
 0x10f   : > { %v3287_v6 = vpop.permute.xlu2 %1124 }
 0x110   : > { %1416 = vrot.lane.b32.xlu2 %v3258_v55, %s2932_s9  ;;  %v1755_v21 = vsel %vm1754_vm5, %v1723_v5, %v3287_v6 }
 0x111   : > { %1134 = vrot.lane.b32.xlu1 %v3279_v3, %s2929_s19 }
 0x115   : > { %1089 = vrot.lane.b32.xlu0 %v3291_v10, %s2928_s17 }
 0x118   : > { %996 = vrot.lane.b32.xlu2 %v3297_v12, %s2927_s12 }
 0x119   : > { %1418 = vrot.lane.b32.xlu1 %v3279_v3, %s2932_s9 }
 0x11a   : > { %v3304_v16 = vpop.permute.xlu2 %1033 }
 0x11d   : > { %950 = vrot.lane.b32.xlu0 %v787_v24, %s2927_s12 }
 0x120   : > { %948 = vrot.lane.b32.xlu2 %v785_v25, %s2927_s12 }
 0x121   : > { %1091 = vrot.lane.b32.xlu1 %v3311_v28, %s2928_s17 }
 0x122   : > { %v3318_v33 = vpop.permute.xlu2 %1220 }
 0x123   : > { %v1788_v43 = vsel %vm1787_vm6, %v1755_v21, %v3318_v33 }
 0x125   : > { %1041 = vrot.lane.b32.xlu0 %v863_v36, %s2928_s17 }
 0x128   : > { %1511 = vrot.lane.b32.xlu2 %v787_v24, %s2934_s23 }
 0x129   : > { %1043 = vrot.lane.b32.xlu1 %v865_v39, %s2928_s17 }
 0x12a   : > { %v3328_v42 = vpop.permute.xlu2 %1318 }
 0x12d   : > { %1509 = vrot.lane.b32.xlu0 %v785_v25, %s2934_s23 }
 0x12f   : > { %v3333_v45 = vpop.permute.xlu0 %1126 }
 0x130   : > { %1324 = vrot.lane.b32.xlu2 %v863_v36, %s2931_s20 }
 0x131   : > { %1602 = vrot.lane.b32.xlu1 %v863_v36, %s4911_s21 }
 0x132   : > { %v3340_v49 = vpop.permute.xlu2 %1130 }
 0x133   : > { %v3346_v52 = vpop.permute.xlu1 %942 }
 0x135   : > { %1604 = vrot.lane.b32.xlu0 %v865_v39, %s4911_s21  ;;  %s4179_s21 = scalar_lea.vmem [#allocation5], %s5027_s18  ;;  %s2518_s18 = scalar_lea.sflag [#allocation4], %s3062_s22 }
 0x137   : > { %v3358_v59 = vpop.permute.xlu0 %940 }
 0x138   : > { %1136 = vrot.lane.b32.xlu2 %v3352_v54, %s2929_s19 }
 0x139   : > { %1228 = vrot.lane.b32.xlu1 %v785_v25, %s2930_s15 }
 0x13a   : > { %v3366_v61 = vpop.permute.xlu2 %1087 }
 0x13b   : > { %4987 = vst [vmem:[#allocation23_spill] sm:$0xff] %v3366_v61  ;;  %v3371_v4 = vpop.permute.xlu1 %1222 }
 0x13d   : > { %1230 = vrot.lane.b32.xlu0 %v787_v24, %s2930_s15  ;;  %v791_v24 = vrot.slane %v726_v14, 1 }
 0x13f   : > { %v3380_v11 = vpop.permute.xlu0 %1035  ;;  %v792_v36 = vsel %vm770_vm3, %v789_v29, %v791_v24  ;;  %v3432_v24 = vpop.f32.mrf.mxu0 }
 0x140   : > { %1422 = vrot.lane.b32.xlu2 %v3383_v13, %s2932_s9 }
 0x141   : > { %1326 = vrot.lane.b32.xlu1 %v865_v39, %s2931_s20  ;;  %v790_v39 = vsel %vm770_vm3, %v788_v30, %v789_v29  ;;  %v555_v30 = vmax.f32 %v476_v7, 0.0 }
 0x142   : > { %v3392_v23 = vpop.permute.xlu2 %946 }
 0x143   : > { %v3394_v25 = vpop.permute.xlu1 %1128 }
 0x145   : > { %1420 = vrot.lane.b32.xlu0 %v3352_v54, %s2932_s9 }
 0x147   : > { %v1317_v34 = vpop.permute.xlu0 %1316  ;;  %v484_v53 = vpop.f32.mrf.mxu0 }
 0x148   : > { %954 = vrot.lane.b32.xlu2 %v792_v36, %s2927_s12  ;;  %v1821_v29 = vsel %vm1820_vm8, %v1788_v43, %v1317_v34  ;;  %v624_v34 = vrot.slane %v555_v30, 7 }
 0x149   : > { %952 = vrot.lane.b32.xlu1 %v790_v39, %s2927_s12 }
 0x14a   : > { %v3404_v41 = vpop.permute.xlu2 %1039 }
 0x14b   : > { %v1413_v44 = vpop.permute.xlu1 %1412 }
 0x14c   : > { %v1854_v38 = vsel %vm1853_vm7, %v1821_v29, %v1413_v44  ;;  %v556_v44 = vmax.f32 %v479_v47, 0.0 }
 0x14d   : > { %1138 = vrot.lane.b32.xlu0 %v3383_v13, %s2929_s19 }
 0x14f   : > { %v3410_v48 = vpop.permute.xlu0 %1414 }
 0x150   : > { %1045 = vrot.lane.b32.xlu2 %v868_v50, %s2928_s17 }
 0x151   : > { %1513 = vrot.lane.b32.xlu1 %v790_v39, %s2934_s23 }
 0x152   : > { %v1506_v56 = vpop.permute.xlu2 %1505 }
 0x153   : > { %v3415_v57 = vpop.permute.xlu1 %994  ;;  %v1887_v6 = vsel %vm1886_vm9, %v1854_v38, %v1506_v56  ;;  %v3451_v56 = vsel %vm611_vm1, 0.0, %v624_v34  ;;  %v487_v38 = vpop.f32.mrf.mxu0 }
 0x154   : > { %4989 = vst [vmem:[#allocation25_spill] sm:$0xff] %v3415_v57 }
 0x155   : > { %1047 = vrot.lane.b32.xlu0 %v870_v60, %s2928_s17  ;;  %4993 = vst [vmem:[#allocation28_spill] sm:$0xff] %v3451_v56 }
 0x157   : > { %v3421_v63 = vpop.permute.xlu0 %992 }
 0x158   : > { %4990 = vst [vmem:[#allocation26_spill] sm:$0xff] %v3421_v63  ;;  %1606 = vrot.lane.b32.xlu2 %v868_v50, %s4991_s8 }
 0x159   : > { %1608 = vrot.lane.b32.xlu1 %v870_v60, %s4991_s8 }
 0x15a   : > { %v1601_v14 = vpop.permute.xlu2 %1600 }
 0x15b   : > { %v3430_v37 = vpop.permute.xlu1 %1085 }
 0x15c   : > { %4992 = vst [vmem:[#allocation27_spill] sm:$0xff] %v3430_v37 }
 0x15d   : > { %1515 = vrot.lane.b32.xlu0 %v792_v36, %s2934_s23 }
 0x15f   : > { %v1599_v46 = vpop.permute.xlu0 %1598 }
 0x160   : > { %1232 = vrot.lane.b32.xlu2 %v790_v39, %s2930_s15  ;;  %v1920_v33 = vsel %vm1919_vm10, %v1887_v6, %v1599_v46  ;;  %v625_v39 = vrot.slane %v556_v44, 7  ;;  %v793_v6 = vrot.slane %v3451_v56, 1 }
 0x161   : > { %1234 = vrot.lane.b32.xlu1 %v792_v36, %s2930_s15  ;;  %2647 = vmatmul.msk.f32.vlgmr.msra.gmra.mxu1 %vm1965_vm11, %v1920_v33 }
 0x162   : > { %v3445_v51 = vpop.permute.xlu2 %1226  ;;  %v3463_v43 = vsel %vm611_vm1, %v624_v34, %v625_v39  ;;  %v727_v30 = vsel %vm611_vm1, %v625_v39, 0.0 }
 0x163   : > { %v3447_v62 = vpop.permute.xlu1 %944  ;;  %4994 = vst [vmem:[#allocation29_spill] sm:$0xff] %v3463_v43  ;;  %v794_v46 = vrot.slane %v3463_v43, 1  ;;  %v872_v34 = vrot.slane %v3463_v43, 2  ;;  %v796_v44 = vrot.slane %v727_v30, 1 }
 0x165   : > { %1328 = vrot.lane.b32.xlu0 %v868_v50, %s2931_s20  ;;  %v1756_v50 = vsel %vm1754_vm5, %v1723_v5, %v3333_v45 }
 0x166   : > { %v1789_v29 = vsel %vm1787_vm6, %v1756_v50, %v3371_v4  ;;  %v874_v4 = vrot.slane %v727_v30, 2  ;;  %v795_v50 = vsel %vm770_vm3, %v793_v6, %v794_v46  ;;  %v871_v30 = vrot.slane %v3451_v56, 2  ;;  %v490_v6 = vpop.f32.mrf.mxu0 }
 0x167   : > { %v3453_v7 = vpop.permute.xlu0 %1224  ;;  %v1822_v45 = vsel %vm1820_vm8, %v1789_v29, %v3328_v42  ;;  %v491_v19 = vadd.f32 %v3135_v26, %v490_v6 }
 0x168   : > { %1330 = vrot.lane.b32.xlu2 %v870_v60, %s2931_s20  ;;  %v1855_v47 = vsel %vm1853_vm7, %v1822_v45, %v3410_v48  ;;  %v3495_v29 = vsel %vm848_vm2, %v872_v34, %v874_v4  ;;  %v3498_v48 = vsel %vm770_vm3, %v794_v46, %v796_v44  ;;  %v873_v45 = vsel %vm848_vm2, %v871_v30, %v872_v34 }
 0x169   : > { %1140 = vrot.lane.b32.xlu1 %v3451_v56, %s2929_s19  ;;  %v482_v46 = vadd.f32 %v3135_v26, %v3432_v24  ;;  %v560_v58 = vmax.f32 %v491_v19, 0.0 }
 0x16a   : > { %v3458_v36 = vpop.permute.xlu2 %1416 }
 0x16b   : > { %v3460_v21 = vpop.permute.xlu1 %1037  ;;  %v631_v10 = vrot.slane %v560_v58, 7 }
 0x16d   : > { %1426 = vrot.lane.b32.xlu0 %v3463_v43, %s2932_s9 }
 0x16f   : > { %v3471_v60 = vpop.permute.xlu0 %1322 }
 0x170   : > { %1142 = vrot.lane.b32.xlu2 %v3463_v43, %s2929_s19 }
 0x171   : > { %1424 = vrot.lane.b32.xlu1 %v3451_v56, %s2932_s9 }
 0x172   : > { %v3482_v5 = vpop.permute.xlu2 %996 }
 0x173   : > { %4995 = vst [vmem:[#allocation30_spill] sm:$0xff] %v3482_v5  ;;  %v1508_v33 = vpop.permute.xlu1 %1507  ;;  %v493_v5 = vpop.f32.mrf.mxu0 }
 0x174   : > { %v1888_v39 = vsel %vm1886_vm9, %v1855_v47, %v1508_v33  ;;  %v485_v47 = vadd.f32 %v3135_v26, %v484_v53  ;;  %v557_v33 = vmax.f32 %v482_v46, 0.0 }
 0x175   : > { %956 = vrot.lane.b32.xlu0 %v795_v50, %s2927_s12  ;;  %v1921_v17 = vsel %vm1919_vm10, %v1888_v39, %v1601_v14 }
 0x176   : > { %2648 = vmatmul.msk.f32.gmra.mxu1 %vm1965_vm11, %v1921_v17  ;;  %v558_v34 = vmax.f32 %v485_v47, 0.0  ;;  %v627_v30 = vrot.slane %v557_v33, 7 }
 0x177   : > { %v3492_v42 = vpop.permute.xlu0 %1132 }
 0x178   : > { %1051 = vrot.lane.b32.xlu2 %v3495_v29, %s2928_s17  ;;  %v628_v24 = vrot.slane %v558_v34, 7  ;;  %v3528_v53 = vsel %vm611_vm1, 0.0, %v627_v30 }
 0x179   : > { %958 = vrot.lane.b32.xlu1 %v3498_v48, %s2927_s12  ;;  %4998 = vst [vmem:[#allocation33_spill] sm:$0xff] %v3528_v53  ;;  %v876_v6 = vrot.slane %v3528_v53, 2 }
 0x17a   : > { %v3505_v14 = vpop.permute.xlu2 %948  ;;  %v3535_v47 = vsel %vm611_vm1, %v627_v30, %v628_v24  ;;  %v488_v30 = vadd.f32 %v3135_v26, %v487_v38 }
 0x17b   : > { %v1321_v17 = vpop.permute.xlu1 %1320  ;;  %v496_v33 = vpop.f32.mrf.mxu0  ;;  %v799_v57 = vrot.slane %v3535_v47, 1 }
 0x17c   : > { %v559_v1 = vmax.f32 %v488_v30, 0.0 }
 0x17d   : > { %1610 = vrot.lane.b32.xlu0 %v873_v45, %s4991_s8 }
 0x17f   : > { %v3511_v4 = vpop.permute.xlu0 %998 }
 0x180   : > { %4996 = vst [vmem:[#allocation31_spill] sm:$0xff] %v3511_v4  ;;  %1517 = vrot.lane.b32.xlu2 %v795_v50, %s2934_s23 }
 0x181   : > { %1049 = vrot.lane.b32.xlu1 %v873_v45, %s2928_s17 }
 0x182   : > { %v3516_v44 = vpop.permute.xlu2 %1511 }
 0x183   : > { %v3518_v39 = vpop.permute.xlu1 %1134  ;;  %v3563_v38 = vpop.f32.mrf.mxu0 }
 0x185   : > { %1236 = vrot.lane.b32.xlu0 %v795_v50, %s2930_s15  ;;  %v728_v50 = vsel %vm611_vm1, %v628_v24, 0.0  ;;  %v798_v24 = vrot.slane %v3528_v53, 1 }
 0x187   : > { %v3521_v61 = vpop.permute.xlu0 %1089 }
 0x188   : > { %4997 = vst [vmem:[#allocation32_spill] sm:$0xff] %v3521_v61  ;;  %1612 = vrot.lane.b32.xlu2 %v3495_v29, %s4991_s8  ;;  %v801_v61 = vrot.slane %v728_v50, 1 }
 0x189   : > { %1519 = vrot.lane.b32.xlu1 %v3498_v48, %s2934_s23 }
 0x18a   : > { %v3530_v46 = vpop.permute.xlu2 %1324  ;;  %v3554_v18 = vsel %vm770_vm3, %v799_v57, %v801_v61  ;;  %v877_v61 = vrot.slane %v3535_v47, 2 }
 0x18b   : > { %v3532_v4 = vpop.permute.xlu1 %1418 }
 0x18c   : > { %v3581_v2 = vsel %vm848_vm2, %v876_v6, %v877_v61 }
 0x18d   : > { %1144 = vrot.lane.b32.xlu0 %v3528_v53, %s2929_s19 }
 0x18f   : > { %v3540_v34 = vpop.permute.xlu0 %950 }
 0x190   : > { %1428 = vrot.lane.b32.xlu2 %v3528_v53, %s2932_s9 }
 0x191   : > { %1332 = vrot.lane.b32.xlu1 %v873_v45, %s2931_s20  ;;  %v3561_v45 = vsel %vm770_vm3, %v798_v24, %v799_v57  ;;  %v630_v57 = vrot.slane %v559_v1, 7  ;;  %v879_v24 = vrot.slane %v728_v50, 2 }
 0x192   : > { %v3546_v37 = vpop.permute.xlu2 %1136 }
 0x193   : > { %v3549_v63 = vpop.permute.xlu1 %1091  ;;  %v3590_v1 = vsel %vm611_vm1, 0.0, %v630_v57 }
 0x194   : > { %4999 = vst [vmem:[#allocation34_spill] sm:$0xff] %v3549_v63  ;;  %v1693_v63 = vsel %vm1691_vm4, %v3141_v32, %v3358_v59 }
 0x195   : > { %962 = vrot.lane.b32.xlu0 %v3554_v18, %s2927_s12  ;;  %v1724_v12 = vsel %vm337_vm0, %v1693_v63, %v3304_v16  ;;  %v729_v16 = vsel %vm611_vm1, %v631_v10, 0.0  ;;  %v3595_v63 = vsel %vm848_vm2, %v877_v61, %v879_v24 }
 0x196   : > { %v1757_v20 = vsel %vm1754_vm5, %v1724_v12, %v3394_v25  ;;  %v3600_v12 = vsel %vm611_vm1, %v630_v57, %v631_v10  ;;  %v494_v25 = vadd.f32 %v3135_v26, %v493_v5  ;;  %v806_v61 = vrot.slane %v729_v16, 1 }
 0x197   : > { %v3558_v28 = vpop.permute.xlu0 %1041  ;;  %v1790_v32 = vsel %vm1787_vm6, %v1757_v20, %v3453_v7  ;;  %v497_v20 = vadd.f32 %v3135_v26, %v496_v33  ;;  %v1694_v7 = vsel %vm1691_vm4, %v3152_v40, %v3346_v52  ;;  %v804_v57 = vrot.slane %v3600_v12, 1 }
 0x198   : > { %960 = vrot.lane.b32.xlu2 %v3561_v45, %s2927_s12  ;;  %v1823_v58 = vsel %vm1820_vm8, %v1790_v32, %v1321_v17  ;;  %v502_v17 = vpop.f32.mrf.mxu0  ;;  %v1725_v50 = vsel %vm337_vm0, %v1694_v7, %v3380_v11  ;;  %v803_v52 = vrot.slane %v3590_v1, 1  ;;  %v561_v24 = vmax.f32 %v494_v25, 0.0 }
 0x199   : > { %1146 = vrot.lane.b32.xlu1 %v3535_v47, %s2929_s19  ;;  %v1856_v6 = vsel %vm1853_vm7, %v1823_v58, %v3458_v36  ;;  %v562_v32 = vmax.f32 %v497_v20, 0.0  ;;  %v1758_v11 = vsel %vm1754_vm5, %v1725_v50, %v3340_v49  ;;  %v3629_v7 = vsel %vm770_vm3, %v804_v57, %v806_v61 }
 0x19a   : > { %v3574_v30 = vpop.permute.xlu2 %1422  ;;  %v1791_v36 = vsel %vm1787_vm6, %v1758_v11, %v3445_v51  ;;  %v884_v25 = vrot.slane %v729_v16, 2  ;;  %v3634_v49 = vsel %vm770_vm3, %v803_v52, %v804_v57  ;;  %v882_v50 = vrot.slane %v3600_v12, 2 }
 0x19b   : > { %v3576_v19 = vpop.permute.xlu1 %1043  ;;  %v1824_v58 = vsel %vm1820_vm8, %v1791_v36, %v3471_v60  ;;  %v633_v51 = vrot.slane %v561_v24, 7 }
 0x19c   : > { %v1857_v20 = vsel %vm1853_vm7, %v1824_v58, %v3532_v4  ;;  %v881_v4 = vrot.slane %v3590_v1, 2  ;;  %v3648_v57 = vsel %vm848_vm2, %v882_v50, %v884_v25 }
 0x19d   : > { %1053 = vrot.lane.b32.xlu0 %v3581_v2, %s2928_s17  ;;  %v1890_v16 = vsel %vm1886_vm9, %v1857_v20, %v3516_v44  ;;  %v500_v44 = vadd.f32 %v3135_v26, %v3563_v38 }
 0x19f   : > { %v1510_v59 = vpop.permute.xlu0 %1509  ;;  %v563_v38 = vmax.f32 %v500_v44, 0.0 }
 0x1a0   : > { %1148 = vrot.lane.b32.xlu2 %v3590_v1, %s2929_s19  ;;  %v1889_v5 = vsel %vm1886_vm9, %v1856_v6, %v1510_v59  ;;  %v634_v6 = vrot.slane %v562_v32, 7  ;;  %v3664_v32 = vsel %vm848_vm2, %v881_v4, %v882_v50 }
 0x1a1   : > { %1055 = vrot.lane.b32.xlu1 %v3595_v63, %s2928_s17  ;;  %v636_v4 = vrot.slane %v563_v38, 7 }
 0x1a2   : > { %v3613_v10 = vpop.permute.xlu2 %954  ;;  %v3654_v52 = vsel %vm611_vm1, %v633_v51, %v634_v6  ;;  %v730_v58 = vsel %vm611_vm1, %v634_v6, 0.0 }
 0x1a3   : > { %5000 = vst [vmem:[#allocation35_spill] sm:$0xff] %v3613_v10  ;;  %v1603_v33 = vpop.permute.xlu1 %1602  ;;  %v809_v36 = vrot.slane %v3654_v52, 1  ;;  %v811_v50 = vrot.slane %v730_v58, 1  ;;  %v889_v22 = vrot.slane %v730_v58, 2  ;;  %v887_v38 = vrot.slane %v3654_v52, 2 }
 0x1a4   : > { %v1922_v40 = vsel %vm1919_vm10, %v1889_v5, %v1603_v33  ;;  %v505_v5 = vpop.f32.mrf.mxu0 }
 0x1a5   : > { %2649 = vmatmul.msk.f32.gmra.mxu1 %vm1965_vm11, %v1922_v40  ;;  %1150 = vrot.lane.b32.xlu0 %v3600_v12, %s2929_s19  ;;  %v3651_v40 = vsel %vm611_vm1, 0.0, %v633_v51 }
 0x1a6   : > { %5001 = vst [vmem:[#allocation36_spill] sm:$0xff] %v3651_v40  ;;  %v808_v11 = vrot.slane %v3651_v40, 1 }
 0x1a7   : > { %v1605_v59 = vpop.permute.xlu0 %1604 }
 0x1a8   : > { %966 = vrot.lane.b32.xlu2 %v3629_v7, %s2927_s12  ;;  %v1923_v33 = vsel %vm1919_vm10, %v1890_v16, %v1605_v59  ;;  %v503_v59 = vadd.f32 %v3135_v26, %v502_v17  ;;  %v3677_v51 = vsel %vm770_vm3, %v808_v11, %v809_v36  ;;  %v3682_v17 = vsel %vm770_vm3, %v809_v36, %v811_v50 }
 0x1a9   : > { %964 = vrot.lane.b32.xlu1 %v3634_v49, %s2927_s12  ;;  %v3689_v11 = vsel %vm611_vm1, 0.0, %v636_v4  ;;  %v1695_v36 = vsel %vm1691_vm4, %v3180_v0, %v3447_v62  ;;  %v886_v50 = vrot.slane %v3651_v40, 2  ;;  %v3714_v0 = vsel %vm848_vm2, %v887_v38, %v889_v22 }
 0x1aa   : > { %v3641_v60 = vpop.permute.xlu2 %1045  ;;  %v564_v16 = vmax.f32 %v503_v59, 0.0  ;;  %v1726_v43 = vsel %vm337_vm0, %v1695_v36, %v3460_v21 }
 0x1ab   : > { %v1229_v61 = vpop.permute.xlu1 %1228  ;;  %v1759_v58 = vsel %vm1754_vm5, %v1726_v43, %v3492_v42  ;;  %v2207_v43 = vld [vmem:[%s4907_s5] sm:$0xff] }
 0x1ac   : > { %v637_v44 = vrot.slane %v564_v16, 7  ;;  %v1792_v27 = vsel %vm1787_vm6, %v1759_v58, %v1229_v61  ;;  %2323 = vmatpush.msra.mxu2 %v2207_v43  ;;  %2729 = vmatpush.msra.mxu3 %v2207_v43  ;;  %v506_v61 = vadd.f32 %v3135_v26, %v505_v5 }
 0x1ad   : > { %2650 = vmatmul.msk.f32.gmra.mxu1 %vm1965_vm11, %v1923_v33  ;;  %1059 = vrot.lane.b32.xlu0 %v3648_v57, %s2928_s17  ;;  %v508_v33 = vpop.f32.mrf.mxu0  ;;  %v1825_v22 = vsel %vm1820_vm8, %v1792_v27, %v3530_v46 }
 0x1ae   : > { %v3701_v16 = vsel %vm611_vm1, %v636_v4, %v637_v44  ;;  %v731_v53 = vsel %vm611_vm1, %v637_v44, 0.0  ;;  %v3717_v44 = vsel %vm848_vm2, %v886_v50, %v887_v38  ;;  %v813_v50 = vrot.slane %v3689_v11, 1 }
 0x1af   : > { %v3661_v24 = vpop.permute.xlu0 %1230  ;;  %v816_v62 = vrot.slane %v731_v53, 1  ;;  %v814_v21 = vrot.slane %v3701_v16, 1  ;;  %v509_v58 = vadd.f32 %v3135_v26, %v508_v33  ;;  %v565_v46 = vmax.f32 %v506_v61, 0.0 }
 0x1b0   : > { %1057 = vrot.lane.b32.xlu2 %v3664_v32, %s2928_s17  ;;  %v1696_v26 = vsel %vm1691_vm4, %v3189_v8, %v3392_v23 }
 0x1b1   : > { %1152 = vrot.lane.b32.xlu1 %v3651_v40, %s2929_s19  ;;  %v3737_v15 = vsel %vm770_vm3, %v814_v21, %v816_v62  ;;  %v566_v33 = vmax.f32 %v509_v58, 0.0  ;;  %v891_v62 = vrot.slane %v3689_v11, 2  ;;  %v639_v8 = vrot.slane %v565_v46, 7 }
 0x1b2   : > { %v1607_v25 = vpop.permute.xlu2 %1606 }
 0x1b3   : > { %v3674_v20 = vpop.permute.xlu1 %1326 }
 0x1b5   : > { %968 = vrot.lane.b32.xlu0 %v3677_v51, %s2927_s12  ;;  %v511_v4 = vpop.f32.mrf.mxu0 }
 0x1b7   : > { %v1421_v6 = vpop.permute.xlu0 %1420 }
 0x1b8   : > { %1154 = vrot.lane.b32.xlu2 %v3654_v52, %s2929_s19  ;;  %v1858_v38 = vsel %vm1853_vm7, %v1825_v22, %v1421_v6  ;;  %v3746_v6 = vsel %vm770_vm3, %v813_v50, %v814_v21 }
 0x1b9   : > { %970 = vrot.lane.b32.xlu1 %v3682_v17, %s2927_s12 }
 0x1ba   : > { %v3691_v59 = vpop.permute.xlu2 %1232 }
 0x1bb   : > { %v3693_v9 = vpop.permute.xlu1 %952 }
 0x1bd   : > { %1156 = vrot.lane.b32.xlu0 %v3689_v11, %s2929_s19  ;;  %v514_v21 = vpop.f32.mrf.mxu0 }
 0x1bf   : > { %v3711_v31 = vpop.permute.xlu0 %1138 }
 0x1c0   : > { %1063 = vrot.lane.b32.xlu2 %v3714_v0, %s2928_s17 }
 0x1c1   : > { %1061 = vrot.lane.b32.xlu1 %v3717_v44, %s2928_s17 }
 0x1c2   : > { %v3729_v42 = vpop.permute.xlu2 %1330 }
 0x1c3   : > { %v1514_v36 = vpop.permute.xlu1 %1513 }
 0x1c4   : > { %v1891_v56 = vsel %vm1886_vm9, %v1858_v38, %v1514_v36  ;;  %v894_v38 = vrot.slane %v731_v53, 2  ;;  %v640_v36 = vrot.slane %v566_v33, 7 }
 0x1c5   : > { %974 = vrot.lane.b32.xlu0 %v3737_v15, %s2927_s12  ;;  %v1924_v27 = vsel %vm1919_vm10, %v1891_v56, %v1607_v25  ;;  %v892_v56 = vrot.slane %v3701_v16, 2  ;;  %v1727_v25 = vsel %vm337_vm0, %v1696_v26, %v3404_v41 }
 0x1c6   : > { %2651 = vmatmul.msk.f32.gmra.mxu1 %vm1965_vm11, %v1924_v27  ;;  %v1760_v43 = vsel %vm1754_vm5, %v1727_v25, %v3518_v39  ;;  %v3773_v39 = vsel %vm611_vm1, 0.0, %v639_v8  ;;  %v3799_v25 = vld [vmem:[%s4904_s2] ss:$0 sm:$0xff] }
 0x1c7   : > { %v3743_v5 = vpop.permute.xlu0 %1047  ;;  %v1793_v23 = vsel %vm1787_vm6, %v1760_v43, %v3661_v24  ;;  %v3768_v41 = vsel %vm848_vm2, %v891_v62, %v892_v56  ;;  %v732_v24 = vsel %vm611_vm1, %v640_v36, 0.0  ;;  %v3780_v46 = vsel %vm848_vm2, %v892_v56, %v894_v38  ;;  %5006 = vst [vmem:[#allocation41_spill] sm:$0xff] %v3799_v25 }
 0x1c8   : > { %5002 = vst [vmem:[#allocation37_spill] sm:$0xff] %v3743_v5  ;;  %972 = vrot.lane.b32.xlu2 %v3746_v6, %s2927_s12  ;;  %v1826_v50 = vsel %vm1820_vm8, %v1793_v23, %v3674_v20  ;;  %v3785_v20 = vsel %vm611_vm1, %v639_v8, %v640_v36  ;;  %v821_v33 = vrot.slane %v732_v24, 1  ;;  %v512_v43 = vadd.f32 %v3799_v25, %v511_v4  ;;  %v517_v8 = vpop.f32.mrf.mxu0 }
 0x1c9   : > { %1158 = vrot.lane.b32.xlu1 %v3701_v16, %s2929_s19  ;;  %v1859_v58 = vsel %vm1853_vm7, %v1826_v50, %v3574_v30  ;;  %5004 = vst [vmem:[#allocation39_spill] sm:$0xff] %v3780_v46  ;;  %v819_v56 = vrot.slane %v3785_v20, 1  ;;  %v818_v23 = vrot.slane %v3773_v39, 1  ;;  %v899_v50 = vrot.slane %v732_v24, 2  ;;  %v3822_v24 = vld [vmem:[%s4906_s4] ss:$0 sm:$0xff] }
 0x1ca   : > { %v3761_v22 = vpop.permute.xlu2 %1142  ;;  %v897_v4 = vrot.slane %v3785_v20, 2 }
 0x1cb   : > { %5003 = vst [vmem:[#allocation38_spill] sm:$0xff] %v3761_v22  ;;  %v1609_v61 = vpop.permute.xlu1 %1608  ;;  %v3807_v36 = vsel %vm770_vm3, %v819_v56, %v821_v33  ;;  %v896_v33 = vrot.slane %v3773_v39, 2 }
 0x1cc   : > { %5007 = vst [vmem:[#allocation42_spill] sm:$0xff] %v3807_v36 }
 0x1cd   : > { %1065 = vrot.lane.b32.xlu0 %v3768_v41, %s2928_s17  ;;  %v3835_v5 = vsel %vm848_vm2, %v896_v33, %v897_v4 }
 0x1ce   : > { %5010 = vst [vmem:[#allocation45_spill] sm:$0xff] %v3835_v5 }
 0x1cf   : > { %v1516_v27 = vpop.permute.xlu0 %1515 }
 0x1d0   : > { %v1892_v53 = vsel %vm1886_vm9, %v1859_v58, %v1516_v27  ;;  %1160 = vrot.lane.b32.xlu2 %v3773_v39, %s2929_s19  ;;  %v567_v58 = vmax.f32 %v512_v43, 0.0  ;;  %v3810_v27 = vsel %vm770_vm3, %v818_v23, %v819_v56  ;;  %v3826_v43 = vsel %vm848_vm2, %v897_v4, %v899_v50 }
 0x1d1   : > { %1067 = vrot.lane.b32.xlu1 %v3780_v46, %s2928_s17  ;;  %v1925_v26 = vsel %vm1919_vm10, %v1892_v53, %v1609_v61  ;;  %v515_v61 = vadd.f32 %v3799_v25, %v514_v21  ;;  %5008 = vst [vmem:[#allocation43_spill] sm:$0xff] %v3810_v27 }
 0x1d2   : > { %v3790_v30 = vpop.permute.xlu2 %1051  ;;  %2652 = vmatmul.msk.f32.gmra.mxu1 %vm1965_vm11, %v1925_v26  ;;  %v642_v56 = vrot.slane %v567_v58, 7  ;;  %5009 = vst [vmem:[#allocation44_spill] sm:$0xff] %v3826_v43 }
 0x1d3   : > { %5005 = vst [vmem:[#allocation40_spill] sm:$0xff] %v3790_v30  ;;  %v3793_v62 = vpop.permute.xlu1 %1234  ;;  %v568_v53 = vmax.f32 %v515_v61, 0.0  ;;  %v520_v61 = vpop.f32.mrf.mxu0 }
 0x1d4   : > { %v521_v30 = vadd.f32 %v3799_v25, %v520_v61  ;;  %v3838_v58 = vsel %vm611_vm1, 0.0, %v642_v56  ;;  %v518_v61 = vadd.f32 %v3799_v25, %v517_v8 }
 0x1d5   : > { %1162 = vrot.lane.b32.xlu0 %v3785_v20, %s2929_s19  ;;  %v643_v23 = vrot.slane %v568_v53, 7 }
 0x1d6   : > { %v570_v4 = vmax.f32 %v521_v30, 0.0  ;;  %v569_v10 = vmax.f32 %v518_v61, 0.0 }
 0x1d7   : > { %v1329_v38 = vpop.permute.xlu0 %1328  ;;  %v3843_v50 = vsel %vm611_vm1, %v642_v56, %v643_v23  ;;  %v733_v53 = vsel %vm611_vm1, %v643_v23, 0.0  ;;  %v1697_v56 = vsel %vm1691_vm4, %v3258_v55, %v3505_v14 }
 0x1d8   : > { %978 = vrot.lane.b32.xlu2 %v3807_v36, %s2927_s12  ;;  %v826_v13 = vrot.slane %v733_v53, 1  ;;  %v1728_v8 = vsel %vm337_vm0, %v1697_v56, %v3558_v28  ;;  %v645_v61 = vrot.slane %v569_v10, 7  ;;  %v902_v10 = vrot.slane %v3843_v50, 2 }
 0x1d9   : > { %976 = vrot.lane.b32.xlu1 %v3810_v27, %s2927_s12  ;;  %v1761_v55 = vsel %vm1754_vm5, %v1728_v8, %v3546_v37 }
 0x1da   : > { %v1518_v21 = vpop.permute.xlu2 %1517  ;;  %v1794_v28 = vsel %vm1787_vm6, %v1761_v55, %v3691_v59  ;;  %v901_v59 = vrot.slane %v3838_v58, 2  ;;  %v3897_v55 = vsel %vm611_vm1, 0.0, %v645_v61 }
 0x1db   : > { %v3817_v26 = vpop.permute.xlu1 %1140  ;;  %v523_v46 = vpop.f32.mrf.mxu0 }
 0x1dc   : > { %v524_v37 = vadd.f32 %v3799_v25, %v523_v46 }
 0x1dd   : > { %1071 = vrot.lane.b32.xlu0 %v3826_v43, %s2928_s17 }
 0x1de   : > { %v2079_v36 = vpop.f32.mrf.mxu1 }
 0x1df   : > { %v2080_v27 = vadd.f32 %v3822_v24, %v2079_v36  ;;  %v3832_v22 = vpop.permute.xlu0 %1426 }
 0x1e0   : > { %1069 = vrot.lane.b32.xlu2 %v3835_v5, %s2928_s17  ;;  %v824_v5 = vrot.slane %v3843_v50, 1 }
 0x1e1   : > { %v2175_v43 = vmax.f32 %v2080_v27, 0.0  ;;  %1164 = vrot.lane.b32.xlu1 %v3838_v58, %s2929_s19  ;;  %v646_v27 = vrot.slane %v570_v4, 7 }
 0x1e2   : > { %v3849_v36 = vpop.permute.xlu2 %1612  ;;  %v3863_v30 = vsel %vm770_vm3, %v824_v5, %v826_v13  ;;  %v904_v13 = vrot.slane %v733_v53, 2 }
 0x1e3   : > { %v1425_v33 = vpop.permute.xlu1 %1424  ;;  %2679 = vmatmul.msk.f32.vlgmr.msra.gmra.mxu2 %vm1691_vm4, %v2175_v43  ;;  %5011 = vst [vmem:[#allocation46_spill] sm:$0xff] %v3863_v30  ;;  %v823_v43 = vrot.slane %v3838_v58, 1  ;;  %v3877_v4 = vsel %vm611_vm1, %v646_v27, 0.0  ;;  %v3890_v53 = vsel %vm611_vm1, %v645_v61, %v646_v27  ;;  %v3905_v27 = vsel %vm848_vm2, %v901_v59, %v902_v10 }
 0x1e4   : > { %v831_v46 = vrot.slane %v3877_v4, 1  ;;  %5013 = vst [vmem:[#allocation48_spill] sm:$0xff] %v3905_v27  ;;  %v829_v61 = vrot.slane %v3890_v53, 1  ;;  %v1698_v59 = vsel %vm1691_vm4, %v3279_v3, %v3540_v34 }
 0x1e5   : > { %1521 = vrot.lane.b32.xlu0 %v3561_v45, %s2934_s23 }
 0x1e7   : > { %v3860_v23 = vpop.permute.xlu0 %956 }
 0x1e8   : > { %1238 = vrot.lane.b32.xlu2 %v3498_v48, %s2930_s15  ;;  %v1827_v48 = vsel %vm1820_vm8, %v1794_v28, %v1329_v38  ;;  %v527_v38 = vadd.f32 %v3799_v25, %v3146_v35  ;;  %v571_v28 = vmax.f32 %v524_v37, 0.0 }
 0x1e9   : > { %982 = vrot.lane.b32.xlu1 %v3863_v30, %s2927_s12  ;;  %v1860_v8 = vsel %vm1853_vm7, %v1827_v48, %v1425_v33  ;;  %v3886_v30 = vsel %vm770_vm3, %v823_v43, %v824_v5  ;;  %v3901_v5 = vsel %vm848_vm2, %v902_v10, %v904_v13  ;;  %v828_v10 = vrot.slane %v3897_v55, 1 }
 0x1ea   : > { %v3874_v14 = vpop.permute.xlu2 %1428  ;;  %5012 = vst [vmem:[#allocation47_spill] sm:$0xff] %v3901_v5  ;;  %v1893_v43 = vsel %vm1886_vm9, %v1860_v8, %v1518_v21  ;;  %v572_v13 = vmax.f32 %v527_v38, 0.0  ;;  %v648_v8 = vrot.slane %v571_v28, 7  ;;  %v1729_v38 = vsel %vm337_vm0, %v1698_v59, %v3576_v19 }
 0x1eb   : > { %v3880_v56 = vpop.permute.xlu1 %958  ;;  %v1762_v25 = vsel %vm1754_vm5, %v1729_v38, %v3711_v31  ;;  %v3937_v34 = vsel %vm770_vm3, %v828_v10, %v829_v61  ;;  %v906_v19 = vrot.slane %v3897_v55, 2  ;;  %v907_v31 = vrot.slane %v3890_v53, 2 }
 0x1ec   : > { %5014 = vst [vmem:[#allocation49_spill] sm:$0xff] %v3937_v34  ;;  %v909_v59 = vrot.slane %v3877_v4, 2  ;;  %v3973_v4 = vsel %vm611_vm1, 0.0, %v648_v8 }
 0x1ed   : > { %980 = vrot.lane.b32.xlu0 %v3886_v30, %s2927_s12  ;;  %v3960_v38 = vsel %vm848_vm2, %v906_v19, %v907_v31 }
 0x1ee   : > { %5015 = vst [vmem:[#allocation50_spill] sm:$0xff] %v3960_v38 }
 0x1ef   : > { %v1611_v33 = vpop.permute.xlu0 %1610 }
 0x1f0   : > { %1075 = vrot.lane.b32.xlu2 %v3901_v5, %s2928_s17  ;;  %v1926_v35 = vsel %vm1919_vm10, %v1893_v43, %v1611_v33  ;;  %v3924_v43 = vsel %vm770_vm3, %v829_v61, %v831_v46  ;;  %v1795_v5 = vsel %vm1787_vm6, %v1762_v25, %v3793_v62 }
 0x1f1   : > { %1073 = vrot.lane.b32.xlu1 %v3905_v27, %s2928_s17  ;;  %2653 = vmatmul.msk.f32.gmra.mxu1 %vm1965_vm11, %v1926_v35  ;;  %v649_v35 = vrot.slane %v572_v13, 7  ;;  %v1828_v25 = vsel %vm1820_vm8, %v1795_v5, %v3729_v42 }
 0x1f2   : > { %v3914_v48 = vpop.permute.xlu2 %960  ;;  %v1861_v13 = vsel %vm1853_vm7, %v1828_v25, %v3832_v22 }
 0x1f3   : > { %v3916_v21 = vpop.permute.xlu1 %1049  ;;  %v2082_v37 = vpop.f32.mrf.mxu1  ;;  %v3940_v46 = vsel %vm611_vm1, %v648_v8, %v649_v35  ;;  %v735_v62 = vsel %vm611_vm1, %v649_v35, 0.0  ;;  %v3976_v35 = vsel %vm848_vm2, %v907_v31, %v909_v59  ;;  %v833_v31 = vrot.slane %v3973_v4, 1 }
 0x1f4   : > { %v2083_v33 = vadd.f32 %v3822_v24, %v2082_v37  ;;  %v834_v10 = vrot.slane %v3940_v46, 1  ;;  %v912_v19 = vrot.slane %v3940_v46, 2 }
 0x1f5   : > { %986 = vrot.lane.b32.xlu0 %v3924_v43, %s2927_s12 }
 0x1f6   : > { %v2176_v28 = vmax.f32 %v2083_v33, 0.0 }
 0x1f7   : > { %v3934_v3 = vpop.permute.xlu0 %1236 }
 0x1f8   : > { %2680 = vmatmul.msk.f32.gmra.mxu2 %vm1691_vm4, %v2176_v28  ;;  %984 = vrot.lane.b32.xlu2 %v3937_v34, %s2927_s12  ;;  %v836_v28 = vrot.slane %v735_v62, 1 }
 0x1f9   : > { %1614 = vrot.lane.b32.xlu1 %v3581_v2, %s4991_s8 }
 0x1fa   : > { %v3952_v61 = vpop.permute.xlu2 %1148  ;;  %v3970_v5 = vsel %vm770_vm3, %v834_v10, %v836_v28 }
 0x1fb   : > { %v1520_v37 = vpop.permute.xlu1 %1519 }
 0x1fc   : > { %v1894_v33 = vsel %vm1886_vm9, %v1861_v13, %v1520_v37  ;;  %v911_v37 = vrot.slane %v3973_v4, 2 }
 0x1fd   : > { %1077 = vrot.lane.b32.xlu0 %v3960_v38, %s2928_s17  ;;  %v1927_v42 = vsel %vm1919_vm10, %v1894_v33, %v3849_v36  ;;  %v914_v36 = vrot.slane %v735_v62, 2  ;;  %v4000_v62 = vsel %vm770_vm3, %v833_v31, %v834_v10 }
 0x1fe   : > { %2654 = vmatmul.msk.f32.gmra.mxu1 %vm1965_vm11, %v1927_v42  ;;  %v3997_v33 = vsel %vm848_vm2, %v911_v37, %v912_v19 }
 0x1ff   : > { %v3967_v22 = vpop.permute.xlu0 %1144  ;;  %v3989_v8 = vsel %vm848_vm2, %v912_v19, %v914_v36 }
 0x200   : > { %990 = vrot.lane.b32.xlu2 %v3970_v5, %s2927_s12 }
 0x201   : > { %1079 = vrot.lane.b32.xlu1 %v3976_v35, %s2928_s17 }
 0x202   : > { %v3983_v25 = vpop.permute.xlu2 %966 }
 0x203   : > { %5016 = vst [vmem:[#allocation51_spill] sm:$0xff] %v3983_v25  ;;  %v3985_v13 = vpop.permute.xlu1 %1332 }
 0x205   : > { %1083 = vrot.lane.b32.xlu0 %v3989_v8, %s2928_s17 }
 0x207   : > { %v3994_v59 = vpop.permute.xlu0 %962 }
 0x208   : > { %1081 = vrot.lane.b32.xlu2 %v3997_v33, %s2928_s17  ;;  %s2530_s17 = sshll.u32 %s4179_s21, 4  ;;  %s2531_s17 = int_to_ptr.vmem [resolvable:$true] %s2530_s17 }
 0x209   : > { %988 = vrot.lane.b32.xlu1 %v4000_v62, %s2927_s12 }
 0x20a   : > { %v4006_v28 = vpop.permute.xlu2 %1057 }
 0x20b   : > { %5017 = vst [vmem:[#allocation52_spill] sm:$0xff] %v4006_v28  ;;  %v4008_v42 = vpop.permute.xlu1 %1146 }
 0x20d   : > { %1334 = vrot.lane.b32.xlu0 %v3495_v29, %s2931_s20 }
 0x20f   : > { %v4012_v36 = vpop.permute.xlu0 %1053 }
 0x210   : > { %1523 = vrot.lane.b32.xlu2 %v3554_v18, %s2934_s23 }
 0x211   : > { %1430 = vrot.lane.b32.xlu1 %v3535_v47, %s2932_s9 }
 0x212   : > { %v4018_v10 = vpop.permute.xlu2 %1154 }
 0x213   : > { %5018 = vst [vmem:[#allocation53_spill] sm:$0xff] %v4018_v10  ;;  %v4020_v19 = vpop.permute.xlu1 %1055 }
 0x215   : > { %1616 = vrot.lane.b32.xlu0 %v3595_v63, %s4991_s8 }
 0x217   : > { %v4024_v37 = vpop.permute.xlu0 %1150 }
 0x218   : > { %1336 = vrot.lane.b32.xlu2 %v3581_v2, %s2931_s20 }
 0x219   : > { %1240 = vrot.lane.b32.xlu1 %v3561_v45, %s2930_s15 }
 0x21a   : > { %v4030_v29 = vpop.permute.xlu2 %1063 }
 0x21b   : > { %5019 = vst [vmem:[#allocation54_spill] sm:$0xff] %v4030_v29  ;;  %v4032_v31 = vpop.permute.xlu1 %964 }
 0x21d   : > { %1432 = vrot.lane.b32.xlu0 %v3590_v1, %s2932_s9 }
 0x21f   : > { %v4036_v38 = vpop.permute.xlu0 %1059 }
 0x220   : > { %5020 = vst [vmem:[#allocation55_spill] sm:$0xff] %v4036_v38  ;;  %1618 = vrot.lane.b32.xlu2 %v3664_v32, %s4991_s8 }
 0x221   : > { %1525 = vrot.lane.b32.xlu1 %v3634_v49, %s2934_s23 }
 0x222   : > { %v2085_v34 = vpop.f32.mrf.mxu1  ;;  %v973_v2 = vpop.permute.xlu2 %972 }
 0x223   : > { %v2086_v10 = vadd.f32 %v3822_v24, %v2085_v34  ;;  %v4043_v45 = vpop.permute.xlu1 %1152 }
 0x225   : > { %v2177_v29 = vmax.f32 %v2086_v10, 0.0  ;;  %1242 = vrot.lane.b32.xlu0 %v3554_v18, %s2930_s15 }
 0x227   : > { %2681 = vmatmul.msk.f32.gmra.mxu2 %vm1691_vm4, %v2177_v29  ;;  %v4048_v25 = vpop.permute.xlu0 %968 }
 0x228   : > { %5021 = vst [vmem:[#allocation56_spill] sm:$0xff] %v4048_v25  ;;  %1434 = vrot.lane.b32.xlu2 %v3600_v12, %s2932_s9 }
 0x229   : > { %1338 = vrot.lane.b32.xlu1 %v3595_v63, %s2931_s20 }
 0x22a   : > { %v2088_v38 = vpop.f32.mrf.mxu1  ;;  %v1161_v27 = vpop.permute.xlu2 %1160 }
 0x22b   : > { %v2089_v34 = vadd.f32 %v3822_v24, %v2088_v38  ;;  %v4055_v28 = vpop.permute.xlu1 %970 }
 0x22c   : > { %5022 = vst [vmem:[#allocation57_spill] sm:$0xff] %v4055_v28 }
 0x22d   : > { %v2178_v10 = vmax.f32 %v2089_v34, 0.0  ;;  %1527 = vrot.lane.b32.xlu0 %v3629_v7, %s2934_s23 }
 0x22f   : > { %2682 = vmatmul.msk.f32.gmra.mxu2 %vm1691_vm4, %v2178_v10  ;;  %v4060_v18 = vpop.permute.xlu0 %1156 }
 0x230   : > { %5023 = vst [vmem:[#allocation58_spill] sm:$0xff] %v4060_v18  ;;  %1244 = vrot.lane.b32.xlu2 %v3634_v49, %s2930_s15  ;;  %v1709_v49 = vsel %vm1691_vm4, %v3689_v11, %v973_v2 }
 0x231   : > { %1620 = vrot.lane.b32.xlu1 %v3648_v57, %s4991_s8 }
 0x232   : > { %v979_v63 = vpop.permute.xlu2 %978 }
 0x233   : > { %v4066_v29 = vpop.permute.xlu1 %1061 }
 0x234   : > { %5024 = vst [vmem:[#allocation59_spill] sm:$0xff] %v4066_v29 }
 0x235   : > { %1340 = vrot.lane.b32.xlu0 %v3664_v32, %s2931_s20 }
 0x237   : > { %v975_v38 = vpop.permute.xlu0 %974 }
 0x238   : > { %1529 = vrot.lane.b32.xlu2 %v3677_v51, %s2934_s23 }
 0x239   : > { %1436 = vrot.lane.b32.xlu1 %v3651_v40, %s2932_s9 }
 0x23a   : > { %v1070_v34 = vpop.permute.xlu2 %1069 }
 0x23b   : > { %v4074_v10 = vpop.permute.xlu1 %1158 }
 0x23c   : > { %5025 = vst [vmem:[#allocation60_spill] sm:$0xff] %v4074_v10 }
 0x23d   : > { %1622 = vrot.lane.b32.xlu0 %v3717_v44, %s4991_s8 }
 0x23f   : > { %v1066_v28 = vpop.permute.xlu0 %1065 }
 0x240   : > { %v1740_v18 = vsel %vm337_vm0, %v1709_v49, %v1066_v28  ;;  %1342 = vrot.lane.b32.xlu2 %v3648_v57, %s2931_s20  ;;  %v1710_v28 = vsel %vm1691_vm4, %v3701_v16, %v975_v38  ;;  %v1712_v38 = vsel %vm1691_vm4, %v3785_v20, %v979_v63 }
 0x241   : > { %1246 = vrot.lane.b32.xlu1 %v3629_v7, %s2930_s15  ;;  %v4086_v32 = vsel %vm1754_vm5, %v1740_v18, %v1161_v27 }
 0x242   : > { %v4088_v10 = vpop.permute.xlu2 %1238 }
 0x243   : > { %v1068_v29 = vpop.permute.xlu1 %1067  ;;  %v2091_v40 = vpop.f32.mrf.mxu1 }
 0x244   : > { %v2092_v25 = vadd.f32 %v3822_v24, %v2091_v40  ;;  %v1741_v2 = vsel %vm337_vm0, %v1710_v28, %v1068_v29  ;;  %v329_v40 = vld [vmem:[%s3068_s16 + $0xf0] sm:$0xff] }
 0x245   : > { %1438 = vrot.lane.b32.xlu0 %v3654_v52, %s2932_s9  ;;  %2645 = vmatmul.msk.f32.gmra.mxu3 %vm337_vm0, %v329_v40  ;;  %v330_v40 = vld [vmem:[%s3068_s16 + $0xf8] sm:$0xff] }
 0x246   : > { %v2179_v57 = vmax.f32 %v2092_v25, 0.0 }
 0x247   : > { %v1163_v49 = vpop.permute.xlu0 %1162 }
 0x248   : > { %2683 = vmatmul.msk.f32.gmra.mxu2 %vm1691_vm4, %v2179_v57  ;;  %v4098_v7 = vsel %vm1754_vm5, %v1741_v2, %v1163_v49  ;;  %1624 = vrot.lane.b32.xlu2 %v3714_v0, %s4991_s8 }
 0x249   : > { %1531 = vrot.lane.b32.xlu1 %v3682_v17, %s2934_s23 }
 0x24a   : > { %v1076_v27 = vpop.permute.xlu2 %1075 }
 0x24b   : > { %v977_v25 = vpop.permute.xlu1 %976 }
 0x24c   : > { %v1711_v18 = vsel %vm1691_vm4, %v3773_v39, %v977_v25 }
 0x24d   : > { %1248 = vrot.lane.b32.xlu0 %v3677_v51, %s2930_s15  ;;  %v1742_v29 = vsel %vm337_vm0, %v1711_v18, %v1070_v34  ;;  %2646 = vmatmul.msk.f32.gmra.mxu3 %vm337_vm0, %v330_v40 }
 0x24f   : > { %v2094_v28 = vpop.f32.mrf.mxu1  ;;  %v1072_v57 = vpop.permute.xlu0 %1071 }
 0x250   : > { %v2095_v2 = vadd.f32 %v3822_v24, %v2094_v28  ;;  %v4115_v49 = vsel %vm337_vm0, %v1712_v38, %v1072_v57  ;;  %1440 = vrot.lane.b32.xlu2 %v3689_v11, %s2932_s9 }
 0x251   : > { %1344 = vrot.lane.b32.xlu1 %v3717_v44, %s2931_s20 }
 0x252   : > { %v2180_v51 = vmax.f32 %v2095_v2, 0.0  ;;  %v985_v25 = vpop.permute.xlu2 %984 }
 0x253   : > { %v1165_v34 = vpop.permute.xlu1 %1164 }
 0x254   : > { %v4124_v63 = vsel %vm1754_vm5, %v1742_v29, %v1165_v34  ;;  %2684 = vmatmul.msk.f32.gmra.mxu2 %vm1691_vm4, %v2180_v51 }
 0x255   : > { %1533 = vrot.lane.b32.xlu0 %v3746_v6, %s2934_s23 }
 0x257   : > { %v1522_v18 = vpop.permute.xlu0 %1521 }
 0x258   : > { %1250 = vrot.lane.b32.xlu2 %v3682_v17, %s2930_s15  ;;  %v1699_v17 = vsel %vm1691_vm4, %v3352_v54, %v3693_v9 }
 0x259   : > { %1626 = vrot.lane.b32.xlu1 %v3768_v41, %s4991_s8  ;;  %v1730_v51 = vsel %vm337_vm0, %v1699_v17, %v3641_v60 }
 0x25a   : > { %v991_v11 = vpop.permute.xlu2 %990  ;;  %v1763_v9 = vsel %vm1754_vm5, %v1730_v51, %v3817_v26 }
 0x25b   : > { %v983_v44 = vpop.permute.xlu1 %982  ;;  %v1796_v54 = vsel %vm1787_vm6, %v1763_v9, %v3934_v3 }
 0x25c   : > { %v1714_v38 = vsel %vm1691_vm4, %v3843_v50, %v983_v44  ;;  %v1829_v44 = vsel %vm1820_vm8, %v1796_v54, %v3985_v13 }
 0x25d   : > { %1170 = vrot.lane.b32.xlu0 %v3890_v53, %s2929_s19  ;;  %v4138_v29 = vsel %vm337_vm0, %v1714_v38, %v1076_v27  ;;  %v4152_v27 = vld [vmem:[%s4908_s6] ss:$0 sm:$0xff] }
 0x25f   : > { %v981_v28 = vpop.permute.xlu0 %980 }
 0x260   : > { %1266 = vrot.lane.b32.xlu2 %v3924_v43, %s2930_s15  ;;  %v1713_v2 = vsel %vm1691_vm4, %v3838_v58, %v981_v28  ;;  %v2792_v28 = vld [vmem:[%s3068_s16] sm:$0xff] }
 0x261   : > { %1346 = vrot.lane.b32.xlu1 %v3714_v0, %s2931_s20 }
 0x262   : > { %v1082_v57 = vpop.permute.xlu2 %1081 }
 0x263   : > { %v1074_v40 = vpop.permute.xlu1 %1073 }
 0x264   : > { %v4157_v34 = vsel %vm337_vm0, %v1713_v2, %v1074_v40 }
 0x265   : > { %5026 = vst [vmem:[#allocation61_spill] sm:$0xff] %v4157_v34  ;;  %1442 = vrot.lane.b32.xlu0 %v3701_v16, %s2932_s9  ;;  %v1862_v16 = vsel %vm1853_vm7, %v1829_v44, %v3874_v14  ;;  %v1715_v14 = vsel %vm1691_vm4, %v3897_v55, %v985_v25  ;;  %v5028_v44 = vld [vmem:[#allocation39_spill] sm:$0xff]  ;;  %v5031_v34 = vld [vmem:[#allocation37_spill] sm:$0xff] }
 0x266   : > { %v2325_v0 = vpop.f32.mrf.mxu2  ;;  %v1895_v3 = vsel %vm1886_vm9, %v1862_v16, %v1522_v18  ;;  %v1718_v16 = vsel %vm1691_vm4, %v3940_v46, %v991_v11 }
 0x267   : > { %v2326_v38 = vadd.f32 %v4152_v27, %v2325_v0  ;;  %v987_v60 = vpop.permute.xlu0 %986 }
 0x268   : > { %1535 = vrot.lane.b32.xlu2 %v3737_v15, %s2934_s23 }
 0x269   : > { %v2421_v17 = vadd.f32 %v2792_v28, %v2326_v38  ;;  %1362 = vrot.lane.b32.xlu1 %v3976_v35, %s2931_s20  ;;  %v1716_v28 = vsel %vm1691_vm4, %v3890_v53, %v987_v60 }
 0x26a   : > { %v1524_v26 = vpop.permute.xlu2 %1523 }
 0x26b   : > { %v2453_v2 = vmax.f32 %v2421_v17, 0.0  ;;  %v1615_v40 = vpop.permute.xlu1 %1614 }
 0x26c   : > { %v1928_v13 = vsel %vm1919_vm10, %v1895_v3, %v1615_v40 }
 0x26d   : > { %2485 = vst.msk [vmem:[%s4179_s21] sm:$0xff] %vm337_vm0, %v2453_v2  ;;  %2655 = vmatmul.msk.f32.gmra.mxu1 %vm1965_vm11, %v1928_v13  ;;  %1458 = vrot.lane.b32.xlu0 %v3940_v46, %s2932_s9 }
 0x26e   : > { %v2097_v51 = vpop.f32.mrf.mxu1 }
 0x26f   : > { %v2098_v18 = vadd.f32 %v3822_v24, %v2097_v51  ;;  %v1078_v9 = vpop.permute.xlu0 %1077 }
 0x270   : > { %v4190_v54 = vsel %vm337_vm0, %v1715_v14, %v1078_v9  ;;  %1551 = vrot.lane.b32.xlu2 %v3970_v5, %s2934_s23 }
 0x271   : > { %v2181_v0 = vmax.f32 %v2098_v18, 0.0  ;;  %1628 = vrot.lane.b32.xlu1 %v5028_v44, %s4991_s8 }
 0x272   : > { %v1337_v38 = vpop.permute.xlu2 %1336 }
 0x273   : > { %v1080_v17 = vpop.permute.xlu1 %1079  ;;  %2685 = vmatmul.msk.f32.gmra.mxu2 %vm1691_vm4, %v2181_v0 }
 0x274   : > { %v4200_v25 = vsel %vm337_vm0, %v1716_v28, %v1080_v17  ;;  %v5030_v28 = vld [vmem:[#allocation24_spill] sm:$0xff] }
 0x275   : > { %1644 = vrot.lane.b32.xlu0 %v3989_v8, %s4991_s8 }
 0x277   : > { %v1084_v3 = vpop.permute.xlu0 %1083 }
 0x278   : > { %v4207_v2 = vsel %vm337_vm0, %v1718_v16, %v1084_v3  ;;  %1172 = vrot.lane.b32.xlu2 %v3973_v4, %s2929_s19  ;;  %v2793_v16 = vld [vmem:[%s3068_s16 + $0x8] sm:$0xff] }
 0x279   : > { %1252 = vrot.lane.b32.xlu1 %v3746_v6, %s2930_s15  ;;  %v5029_v6 = vld [vmem:[#allocation35_spill] sm:$0xff] }
 0x27a   : > { %v1619_v60 = vpop.permute.xlu2 %1618  ;;  %v1700_v17 = vsel %vm1691_vm4, %v5030_v28, %v5029_v6  ;;  %v5033_v28 = vld [vmem:[#allocation12_spill] sm:$0xff] }
 0x27b   : > { %v989_v40 = vpop.permute.xlu1 %988  ;;  %v2100_v13 = vpop.f32.mrf.mxu1 }
 0x27c   : > { %v1717_v51 = vsel %vm1691_vm4, %v3973_v4, %v989_v40  ;;  %v2101_v14 = vadd.f32 %v3822_v24, %v2100_v13  ;;  %v2328_v11 = vpop.f32.mrf.mxu2  ;;  %v1731_v13 = vsel %vm337_vm0, %v1700_v17, %v5031_v34 }
 0x27d   : > { %v2329_v18 = vadd.f32 %v4152_v27, %v2328_v11  ;;  %1348 = vrot.lane.b32.xlu0 %v3768_v41, %s2931_s20  ;;  %v4220_v9 = vsel %vm337_vm0, %v1717_v51, %v1082_v57  ;;  %v5032_v41 = vld [vmem:[#allocation38_spill] sm:$0xff] }
 0x27e   : > { %v2182_v0 = vmax.f32 %v2101_v14, 0.0  ;;  %v1764_v57 = vsel %vm1754_vm5, %v1731_v13, %v5032_v41 }
 0x27f   : > { %v2422_v3 = vadd.f32 %v2793_v16, %v2329_v18  ;;  %v1335_v40 = vpop.permute.xlu0 %1334  ;;  %v1797_v14 = vsel %vm1787_vm6, %v1764_v57, %v4088_v10  ;;  %v5034_v10 = vld [vmem:[#allocation43_spill] sm:$0xff] }
 0x280   : > { %2686 = vmatmul.msk.f32.gmra.mxu2 %vm1691_vm4, %v2182_v0  ;;  %1444 = vrot.lane.b32.xlu2 %v3773_v39, %s2932_s9  ;;  %v1830_v34 = vsel %vm1820_vm8, %v1797_v14, %v1335_v40  ;;  %v5035_v40 = vld [vmem:[#allocation28_spill] sm:$0xff] }
 0x281   : > { %v2454_v51 = vmax.f32 %v2422_v3, 0.0  ;;  %1268 = vrot.lane.b32.xlu1 %v4000_v62, %s2930_s15  ;;  %v1701_v13 = vsel %vm1691_vm4, %v5035_v40, %v3860_v23 }
 0x282   : > { %v1435_v11 = vpop.permute.xlu2 %1434  ;;  %v1732_v41 = vsel %vm337_vm0, %v1701_v13, %v3916_v21 }
 0x283   : > { %2486 = vst.msk [vmem:[%s4179_s21 + $0x8] sm:$0xff] %vm337_vm0, %v2454_v51  ;;  %v1431_v18 = vpop.permute.xlu1 %1430  ;;  %v1765_v57 = vsel %vm1754_vm5, %v1732_v41, %v3967_v22  ;;  %v5040_v41 = vld [vmem:[#allocation40_spill] sm:$0xff] }
 0x284   : > { %v1863_v0 = vsel %vm1853_vm7, %v1830_v34, %v1431_v18  ;;  %v5037_v34 = vld [vmem:[#allocation16_spill] sm:$0xff]  ;;  %v5038_v18 = vld [vmem:[#allocation15_spill] sm:$0xff] }
 0x285   : > { %1364 = vrot.lane.b32.xlu0 %v3997_v33, %s2931_s20  ;;  %v1896_v6 = vsel %vm1886_vm9, %v1863_v0, %v1524_v26  ;;  %v5036_v26 = vld [vmem:[#allocation45_spill] sm:$0xff] }
 0x287   : > { %v1617_v39 = vpop.permute.xlu0 %1616 }
 0x288   : > { %1460 = vrot.lane.b32.xlu2 %v5033_v28, %s2932_s9  ;;  %v1929_v17 = vsel %vm1919_vm10, %v1896_v6, %v1617_v39 }
 0x289   : > { %1537 = vrot.lane.b32.xlu1 %v5034_v10, %s2934_s23  ;;  %2656 = vmatmul.msk.f32.gmra.mxu1 %vm1965_vm11, %v1929_v17 }
 0x28a   : > { %v1245_v16 = vpop.permute.xlu2 %1244 }
 0x28b   : > { %v1241_v3 = vpop.permute.xlu1 %1240 }
 0x28c   : > { %v1798_v51 = vsel %vm1787_vm6, %v1765_v57, %v1241_v3  ;;  %v5039_v3 = vld [vmem:[#allocation29_spill] sm:$0xff] }
 0x28d   : > { %1630 = vrot.lane.b32.xlu0 %v5036_v26, %s4991_s8  ;;  %v1831_v23 = vsel %vm1820_vm8, %v1798_v51, %v1337_v38  ;;  %v1702_v38 = vsel %vm1691_vm4, %v5039_v3, %v3880_v56 }
 0x28f   : > { %v1433_v14 = vpop.permute.xlu0 %1432 }
 0x290   : > { %1646 = vrot.lane.b32.xlu2 %v5037_v34, %s4991_s8  ;;  %v1864_v21 = vsel %vm1853_vm7, %v1831_v23, %v1433_v14 }
 0x291   : > { %1553 = vrot.lane.b32.xlu1 %v5038_v18, %s2934_s23 }
 0x292   : > { %v1530_v0 = vpop.permute.xlu2 %1529 }
 0x293   : > { %v1526_v39 = vpop.permute.xlu1 %1525 }
 0x294   : > { %v1897_v6 = vsel %vm1886_vm9, %v1864_v21, %v1526_v39  ;;  %v5043_v39 = vld [vmem:[#allocation44_spill] sm:$0xff] }
 0x295   : > { %1254 = vrot.lane.b32.xlu0 %v3737_v15, %s2930_s15  ;;  %v1930_v22 = vsel %vm1919_vm10, %v1897_v6, %v1619_v60  ;;  %v1733_v15 = vsel %vm337_vm0, %v1702_v38, %v5040_v41 }
 0x296   : > { %2657 = vmatmul.msk.f32.gmra.mxu1 %vm1965_vm11, %v1930_v22  ;;  %v1766_v60 = vsel %vm1754_vm5, %v1733_v15, %v4008_v42  ;;  %v5044_v22 = vld [vmem:[#allocation11_spill] sm:$0xff] }
 0x297   : > { %v1243_v17 = vpop.permute.xlu0 %1242  ;;  %v2794_v15 = vld [vmem:[%s3068_s16 + $0x10] sm:$0xff] }
 0x298   : > { %1350 = vrot.lane.b32.xlu2 %v5028_v44, %s2931_s20  ;;  %v1799_v44 = vsel %vm1787_vm6, %v1766_v60, %v1243_v17 }
 0x299   : > { %1174 = vrot.lane.b32.xlu1 %v3940_v46, %s2929_s19 }
 0x29a   : > { %v1343_v40 = vpop.permute.xlu2 %1342 }
 0x29b   : > { %v1339_v13 = vpop.permute.xlu1 %1338 }
 0x29c   : > { %v1832_v57 = vsel %vm1820_vm8, %v1799_v44, %v1339_v13  ;;  %v5045_v44 = vld [vmem:[#allocation14_spill] sm:$0xff] }
 0x29d   : > { %1270 = vrot.lane.b32.xlu0 %v3970_v5, %s2930_s15  ;;  %v1865_v56 = vsel %vm1853_vm7, %v1832_v57, %v1435_v11  ;;  %v5041_v5 = vld [vmem:[#allocation33_spill] sm:$0xff] }
 0x29e   : > { %v1703_v21 = vsel %vm1691_vm4, %v5041_v5, %v3914_v48 }
 0x29f   : > { %v1528_v51 = vpop.permute.xlu0 %1527 }
 0x2a0   : > { %1366 = vrot.lane.b32.xlu2 %v3989_v8, %s2931_s20  ;;  %v1898_v14 = vsel %vm1886_vm9, %v1865_v56, %v1528_v51  ;;  %v5042_v8 = vld [vmem:[#allocation42_spill] sm:$0xff]  ;;  %v5046_v56 = vld [vmem:[#allocation13_spill] sm:$0xff] }
 0x2a1   : > { %1446 = vrot.lane.b32.xlu1 %v3785_v20, %s2932_s9  ;;  %v1734_v20 = vsel %vm337_vm0, %v1703_v21, %v4012_v36  ;;  %v2795_v21 = vld [vmem:[%s3068_s16 + $0x18] sm:$0xff] }
 0x2a2   : > { %v1625_v46 = vpop.permute.xlu2 %1624  ;;  %v1767_v6 = vsel %vm1754_vm5, %v1734_v20, %v3952_v61 }
 0x2a3   : > { %v1621_v42 = vpop.permute.xlu1 %1620  ;;  %v1800_v48 = vsel %vm1787_vm6, %v1767_v6, %v1245_v16 }
 0x2a4   : > { %v1931_v23 = vsel %vm1919_vm10, %v1898_v14, %v1621_v42 }
 0x2a5   : > { %2658 = vmatmul.msk.f32.gmra.mxu1 %vm1965_vm11, %v1931_v23  ;;  %1539 = vrot.lane.b32.xlu0 %v5042_v8, %s2934_s23 }
 0x2a7   : > { %v1341_v11 = vpop.permute.xlu0 %1340 }
 0x2a8   : > { %1632 = vrot.lane.b32.xlu2 %v5043_v39, %s4991_s8  ;;  %v1833_v38 = vsel %vm1820_vm8, %v1800_v48, %v1341_v11 }
 0x2a9   : > { %1462 = vrot.lane.b32.xlu1 %v5044_v22, %s2932_s9 }
 0x2aa   : > { %v2331_v17 = vpop.f32.mrf.mxu2  ;;  %v1441_v3 = vpop.permute.xlu2 %1440 }
 0x2ab   : > { %v2332_v13 = vadd.f32 %v4152_v27, %v2331_v17  ;;  %v1437_v36 = vpop.permute.xlu1 %1436 }
 0x2ac   : > { %v1866_v41 = vsel %vm1853_vm7, %v1833_v38, %v1437_v36 }
 0x2ad   : > { %v2423_v60 = vadd.f32 %v2794_v15, %v2332_v13  ;;  %1555 = vrot.lane.b32.xlu0 %v5045_v44, %s2934_s23  ;;  %v1899_v51 = vsel %vm1886_vm9, %v1866_v41, %v1530_v0  ;;  %v5047_v41 = vld [vmem:[#allocation52_spill] sm:$0xff]  ;;  %v5048_v15 = vld [vmem:[#allocation19_spill] sm:$0xff] }
 0x2af   : > { %v2455_v61 = vmax.f32 %v2423_v60, 0.0  ;;  %v1623_v57 = vpop.permute.xlu0 %1622 }
 0x2b0   : > { %1256 = vrot.lane.b32.xlu2 %v5034_v10, %s2930_s15  ;;  %v1932_v16 = vsel %vm1919_vm10, %v1899_v51, %v1623_v57  ;;  %v1704_v10 = vsel %vm1691_vm4, %v3535_v47, %v3994_v59 }
 0x2b1   : > { %2487 = vst.msk [vmem:[%s4179_s21 + $0x10] sm:$0xff] %vm337_vm0, %v2455_v61  ;;  %1648 = vrot.lane.b32.xlu1 %v5046_v56, %s4991_s8  ;;  %2659 = vmatmul.msk.f32.gmra.mxu1 %vm1965_vm11, %v1932_v16  ;;  %v1735_v0 = vsel %vm337_vm0, %v1704_v10, %v4020_v19  ;;  %v5051_v10 = vld [vmem:[#allocation20_spill] sm:$0xff] }
 0x2b2   : > { %v2334_v14 = vpop.f32.mrf.mxu2  ;;  %v4323_v42 = vpop.permute.xlu2 %1250  ;;  %v1768_v11 = vsel %vm1754_vm5, %v1735_v0, %v4024_v37  ;;  %v2796_v0 = vld [vmem:[%s3068_s16 + $0x20] sm:$0xff] }
 0x2b3   : > { %v2335_v23 = vadd.f32 %v4152_v27, %v2334_v14  ;;  %v1247_v5 = vpop.permute.xlu1 %1246 }
 0x2b4   : > { %v1801_v48 = vsel %vm1787_vm6, %v1768_v11, %v1247_v5 }
 0x2b5   : > { %v2424_v20 = vadd.f32 %v2795_v21, %v2335_v23  ;;  %1176 = vrot.lane.b32.xlu0 %v5033_v28, %s2929_s19  ;;  %v1834_v47 = vsel %vm1820_vm8, %v1801_v48, %v1343_v40 }
 0x2b7   : > { %v2456_v6 = vmax.f32 %v2424_v20, 0.0  ;;  %v1439_v17 = vpop.permute.xlu0 %1438 }
 0x2b8   : > { %1272 = vrot.lane.b32.xlu2 %v5038_v18, %s2930_s15  ;;  %v1867_v19 = vsel %vm1853_vm7, %v1834_v47, %v1439_v17 }
 0x2b9   : > { %2488 = vst.msk [vmem:[%s4179_s21 + $0x18] sm:$0xff] %vm337_vm0, %v2456_v6  ;;  %1352 = vrot.lane.b32.xlu1 %v5036_v26, %s2931_s20  ;;  %v1705_v26 = vsel %vm1691_vm4, %v3590_v1, %v4032_v31  ;;  %v5049_v31 = vld [vmem:[#allocation21_spill] sm:$0xff] }
 0x2ba   : > { %v4344_v59 = vpop.permute.xlu2 %1266 }
 0x2bb   : > { %v1532_v38 = vpop.permute.xlu1 %1531 }
 0x2bc   : > { %v1900_v37 = vsel %vm1886_vm9, %v1867_v19, %v1532_v38  ;;  %v5052_v19 = vld [vmem:[#allocation51_spill] sm:$0xff] }
 0x2bd   : > { %1448 = vrot.lane.b32.xlu0 %v3838_v58, %s2932_s9  ;;  %v1933_v13 = vsel %vm1919_vm10, %v1900_v37, %v1625_v46  ;;  %v1736_v58 = vsel %vm337_vm0, %v1705_v26, %v5047_v41  ;;  %v5053_v38 = vld [vmem:[#allocation55_spill] sm:$0xff]  ;;  %v5054_v41 = vld [vmem:[#allocation53_spill] sm:$0xff] }
 0x2be   : > { %2660 = vmatmul.msk.f32.gmra.mxu1 %vm1965_vm11, %v1933_v13  ;;  %v1769_v46 = vsel %vm1754_vm5, %v1736_v58, %v4043_v45  ;;  %v2797_v13 = vld [vmem:[%s3068_s16 + $0x28] sm:$0xff] }
 0x2bf   : > { %v1249_v18 = vpop.permute.xlu0 %1248 }
 0x2c0   : > { %1541 = vrot.lane.b32.xlu2 %v3886_v30, %s2934_s23  ;;  %v1802_v60 = vsel %vm1787_vm6, %v1769_v46, %v1249_v18 }
 0x2c1   : > { %1368 = vrot.lane.b32.xlu1 %v5037_v34, %s2931_s20  ;;  %v5050_v34 = vld [vmem:[#allocation48_spill] sm:$0xff] }
 0x2c2   : > { %v1536_v40 = vpop.permute.xlu2 %1535 }
 0x2c3   : > { %v1345_v36 = vpop.permute.xlu1 %1344 }
 0x2c4   : > { %v1835_v61 = vsel %vm1820_vm8, %v1802_v60, %v1345_v36 }
 0x2c5   : > { %1464 = vrot.lane.b32.xlu0 %v5048_v15, %s2932_s9  ;;  %v1868_v57 = vsel %vm1853_vm7, %v1835_v61, %v1441_v3 }
 0x2c7   : > { %v1534_v1 = vpop.permute.xlu0 %1533 }
 0x2c8   : > { %1557 = vrot.lane.b32.xlu2 %v5049_v31, %s2934_s23  ;;  %v1901_v45 = vsel %vm1886_vm9, %v1868_v57, %v1534_v1  ;;  %v5055_v1 = vld [vmem:[#allocation17_spill] sm:$0xff]  ;;  %v5056_v57 = vld [vmem:[#allocation46_spill] sm:$0xff] }
 0x2c9   : > { %1634 = vrot.lane.b32.xlu1 %v5050_v34, %s4991_s8 }
 0x2ca   : > { %v1552_v51 = vpop.permute.xlu2 %1551 }
 0x2cb   : > { %v1627_v16 = vpop.permute.xlu1 %1626  ;;  %v2337_v14 = vpop.f32.mrf.mxu2 }
 0x2cc   : > { %v2338_v23 = vadd.f32 %v4152_v27, %v2337_v14  ;;  %v1934_v5 = vsel %vm1919_vm10, %v1901_v45, %v1627_v16 }
 0x2cd   : > { %2661 = vmatmul.msk.f32.gmra.mxu1 %vm1965_vm11, %v1934_v5  ;;  %1650 = vrot.lane.b32.xlu0 %v5051_v10, %s4991_s8  ;;  %v541_v5 = vpop.f32.mrf.mxu3 }
 0x2ce   : > { %v2425_v21 = vadd.f32 %v2796_v0, %v2338_v23  ;;  %v5057_v0 = vld [vmem:[#allocation47_spill] sm:$0xff] }
 0x2cf   : > { %v1171_v20 = vpop.permute.xlu0 %1170 }
 0x2d0   : > { %v2457_v11 = vmax.f32 %v2425_v21, 0.0  ;;  %1178 = vrot.lane.b32.xlu2 %v5044_v22, %s2929_s19 }
 0x2d1   : > { %1258 = vrot.lane.b32.xlu1 %v5042_v8, %s2930_s15  ;;  %v1706_v8 = vsel %vm1691_vm4, %v3600_v12, %v5052_v19 }
 0x2d2   : > { %2489 = vst.msk [vmem:[%s4179_s21 + $0x20] sm:$0xff] %vm337_vm0, %v2457_v11  ;;  %v4385_v3 = vpop.permute.xlu2 %1172  ;;  %v1737_v37 = vsel %vm337_vm0, %v1706_v8, %v5053_v38  ;;  %v5058_v11 = vld [vmem:[#allocation22_spill] sm:$0xff]  ;;  %v5060_v38 = vld [vmem:[#allocation41_spill] sm:$0xff] }
 0x2d3   : > { %v1347_v6 = vpop.permute.xlu1 %1346  ;;  %v1770_v58 = vsel %vm1754_vm5, %v1737_v37, %v5054_v41  ;;  %v542_v37 = vadd.f32 %v5060_v38, %v541_v5 }
 0x2d4   : > { %v1803_v12 = vsel %vm1787_vm6, %v1770_v58, %v4323_v42 }
 0x2d5   : > { %1354 = vrot.lane.b32.xlu0 %v5043_v39, %s2931_s20  ;;  %v1836_v46 = vsel %vm1820_vm8, %v1803_v12, %v1347_v6  ;;  %v577_v41 = vmax.f32 %v542_v37, 0.0 }
 0x2d7   : > { %v2340_v48 = vpop.f32.mrf.mxu2  ;;  %v1443_v17 = vpop.permute.xlu0 %1442 }
 0x2d8   : > { %v2341_v47 = vadd.f32 %v4152_v27, %v2340_v48  ;;  %1450 = vrot.lane.b32.xlu2 %v3843_v50, %s2932_s9  ;;  %v1869_v61 = vsel %vm1853_vm7, %v1836_v46, %v1443_v17 }
 0x2d9   : > { %1274 = vrot.lane.b32.xlu1 %v5045_v44, %s2930_s15  ;;  %v1778_v44 = vsel %vm1754_vm5, %v4138_v29, %v1171_v20  ;;  %v1902_v29 = vsel %vm1886_vm9, %v1869_v61, %v1536_v40  ;;  %v5059_v40 = vld [vmem:[#allocation18_spill] sm:$0xff] }
 0x2da   : > { %v2426_v39 = vadd.f32 %v2797_v13, %v2341_v47  ;;  %v4400_v18 = vpop.permute.xlu2 %1444  ;;  %v5064_v61 = vld [vmem:[#allocation58_spill] sm:$0xff] }
 0x2db   : > { %v1363_v26 = vpop.permute.xlu1 %1362 }
 0x2dc   : > { %v2458_v36 = vmax.f32 %v2426_v39, 0.0 }
 0x2dd   : > { %1370 = vrot.lane.b32.xlu0 %v5046_v56, %s2931_s20  ;;  %v1811_v56 = vsel %vm1787_vm6, %v1778_v44, %v4344_v59 }
 0x2de   : > { %2490 = vst.msk [vmem:[%s4179_s21 + $0x28] sm:$0xff] %vm337_vm0, %v2458_v36  ;;  %v1844_v45 = vsel %vm1820_vm8, %v1811_v56, %v1363_v26  ;;  %v5061_v26 = vld [vmem:[#allocation56_spill] sm:$0xff] }
 0x2df   : > { %v1459_v60 = vpop.permute.xlu0 %1458 }
 0x2e0   : > { %1466 = vrot.lane.b32.xlu2 %v5055_v1, %s2932_s9  ;;  %v1877_v14 = vsel %vm1853_vm7, %v1844_v45, %v1459_v60  ;;  %v657_v45 = vrot.slane %v577_v41, 7 }
 0x2e1   : > { %1543 = vrot.lane.b32.xlu1 %v5056_v57, %s2934_s23  ;;  %v1910_v21 = vsel %vm1886_vm9, %v1877_v14, %v1552_v51  ;;  %v544_v51 = vpop.f32.mrf.mxu3 }
 0x2e2   : > { %v4420_v42 = vpop.permute.xlu2 %1460 }
 0x2e3   : > { %v1629_v16 = vpop.permute.xlu1 %1628 }
 0x2e4   : > { %v1935_v23 = vsel %vm1919_vm10, %v1902_v29, %v1629_v16  ;;  %v2798_v29 = vld [vmem:[%s3068_s16 + $0x30] sm:$0xff] }
 0x2e5   : > { %2662 = vmatmul.msk.f32.gmra.mxu1 %vm1965_vm11, %v1935_v23  ;;  %1636 = vrot.lane.b32.xlu0 %v5057_v0, %s4991_s8 }
 0x2e7   : > { %v1645_v59 = vpop.permute.xlu0 %1644 }
 0x2e8   : > { %v1943_v20 = vsel %vm1919_vm10, %v1910_v21, %v1645_v59  ;;  %1652 = vrot.lane.b32.xlu2 %v5058_v11, %s4991_s8 }
 0x2e9   : > { %1559 = vrot.lane.b32.xlu1 %v5059_v40, %s2934_s23  ;;  %2670 = vmatmul.msk.f32.vlgmr.msrb.gmra.mxu3 %vm1965_vm11, %v1943_v20  ;;  %v5065_v20 = vld [vmem:[#allocation49_spill] sm:$0xff] }
 0x2ea   : > { %v2103_v6 = vpop.f32.mrf.mxu1  ;;  %v1647_v48 = vpop.permute.xlu2 %1646 }
 0x2eb   : > { %v2104_v17 = vadd.f32 %v3822_v24, %v2103_v6  ;;  %v1253_v47 = vpop.permute.xlu1 %1252  ;;  %v545_v24 = vadd.f32 %v5060_v38, %v544_v51  ;;  %v4478_v6 = vsel %vm611_vm1, 0.0, %v657_v45 }
 0x2ec   : > { %v928_v37 = vrot.slane %v4478_v6, 1 }
 0x2ed   : > { %v2183_v19 = vmax.f32 %v2104_v17, 0.0  ;;  %1260 = vrot.lane.b32.xlu0 %v3886_v30, %s2930_s15  ;;  %v5062_v30 = vld [vmem:[#allocation36_spill] sm:$0xff]  ;;  %v578_v58 = vmax.f32 %v545_v24, 0.0  ;;  %v1779_v17 = vsel %vm1754_vm5, %v4190_v54, %v4385_v3  ;;  %v5066_v24 = vld [vmem:[#allocation50_spill] sm:$0xff] }
 0x2ee   : > { %v1707_v36 = vsel %vm1691_vm4, %v5062_v30, %v5061_v26 }
 0x2ef   : > { %2687 = vmatmul.msk.f32.gmra.mxu2 %vm1691_vm4, %v2183_v19  ;;  %v1349_v8 = vpop.permute.xlu0 %1348  ;;  %v4460_v16 = vrot.slane %v578_v58, 7 }
 0x2f0   : > { %1356 = vrot.lane.b32.xlu2 %v5050_v34, %s2931_s20  ;;  %v5063_v34 = vld [vmem:[#allocation59_spill] sm:$0xff] }
 0x2f1   : > { %1180 = vrot.lane.b32.xlu1 %v5048_v15, %s2929_s19  ;;  %v1738_v12 = vsel %vm337_vm0, %v1707_v36, %v5063_v34 }
 0x2f2   : > { %v4446_v13 = vpop.permute.xlu2 %1350  ;;  %v1771_v56 = vsel %vm1754_vm5, %v1738_v12, %v5064_v61  ;;  %v4515_v61 = vld [vmem:[%s4906_s4] ss:$0 sm:$0xff] }
 0x2f3   : > { %v1269_v39 = vpop.permute.xlu1 %1268 }
 0x2f4   : > { %v1812_v19 = vsel %vm1787_vm6, %v1779_v17, %v1269_v39 }
 0x2f5   : > { %1276 = vrot.lane.b32.xlu0 %v5049_v31, %s2930_s15  ;;  %v1804_v31 = vsel %vm1787_vm6, %v1771_v56, %v1253_v47 }
 0x2f6   : > { %v2343_v44 = vpop.f32.mrf.mxu2  ;;  %v1837_v5 = vsel %vm1820_vm8, %v1804_v31, %v1349_v8 }
 0x2f7   : > { %v2344_v46 = vadd.f32 %v4152_v27, %v2343_v44  ;;  %v1365_v60 = vpop.permute.xlu0 %1364  ;;  %v1870_v47 = vsel %vm1853_vm7, %v1837_v5, %v4400_v18  ;;  %v933_v18 = vrot.slane %v4478_v6, 2 }
 0x2f8   : > { %1372 = vrot.lane.b32.xlu2 %v5051_v10, %s2931_s20  ;;  %v4471_v10 = vsel %vm611_vm1, %v657_v45, %v4460_v16  ;;  %v1845_v38 = vsel %vm1820_vm8, %v1812_v19, %v1365_v60  ;;  %v5069_v19 = vld [vmem:[#allocation60_spill] sm:$0xff] }
 0x2f9   : > { %v2427_v14 = vadd.f32 %v2798_v29, %v2344_v46  ;;  %1452 = vrot.lane.b32.xlu1 %v3897_v55, %s2932_s9  ;;  %v929_v54 = vrot.slane %v4471_v10, 1  ;;  %v1878_v30 = vsel %vm1853_vm7, %v1845_v38, %v4420_v42  ;;  %v934_v12 = vrot.slane %v4471_v10, 2  ;;  %v2799_v46 = vld [vmem:[%s3068_s16 + $0x38] sm:$0xff] }
 0x2fa   : > { %v4466_v23 = vpop.permute.xlu2 %1366 }
 0x2fb   : > { %v2459_v21 = vmax.f32 %v2427_v14, 0.0  ;;  %v1538_v59 = vpop.permute.xlu1 %1537  ;;  %v4504_v34 = vsel %vm770_vm3, %v928_v37, %v929_v54  ;;  %v4521_v14 = vsel %vm848_vm2, %v933_v18, %v934_v12 }
 0x2fc   : > { %v1903_v51 = vsel %vm1886_vm9, %v1870_v47, %v1538_v59 }
 0x2fd   : > { %2491 = vst.msk [vmem:[%s4179_s21 + $0x30] sm:$0xff] %vm337_vm0, %v2459_v21  ;;  %1545 = vrot.lane.b32.xlu0 %v5065_v20, %s2934_s23  ;;  %v5067_v21 = vld [vmem:[#allocation57_spill] sm:$0xff] }
 0x2fe   : > { %v1708_v59 = vsel %vm1691_vm4, %v3654_v52, %v5067_v21 }
 0x2ff   : > { %v1631_v8 = vpop.permute.xlu0 %1630 }
 0x300   : > { %1638 = vrot.lane.b32.xlu2 %v5066_v24, %s4991_s8  ;;  %v1936_v26 = vsel %vm1919_vm10, %v1903_v51, %v1631_v8 }
 0x301   : > { %1468 = vrot.lane.b32.xlu1 %v4478_v6, %s2932_s9  ;;  %2663 = vmatmul.msk.f32.gmra.mxu1 %vm1965_vm11, %v1936_v26 }
 0x302   : > { %v1633_v3 = vpop.permute.xlu2 %1632 }
 0x303   : > { %v1554_v39 = vpop.permute.xlu1 %1553  ;;  %v2346_v36 = vpop.f32.mrf.mxu2 }
 0x304   : > { %v1911_v41 = vsel %vm1886_vm9, %v1878_v30, %v1554_v39  ;;  %v2347_v58 = vadd.f32 %v4152_v27, %v2346_v36 }
 0x305   : > { %1561 = vrot.lane.b32.xlu0 %v4504_v34, %s2934_s23  ;;  %v1944_v44 = vsel %vm1919_vm10, %v1911_v41, %v1647_v48  ;;  %v738_v41 = vsel %vm611_vm1, %v4460_v16, 0.0 }
 0x306   : > { %v2428_v42 = vadd.f32 %v2799_v46, %v2347_v58  ;;  %2671 = vmatmul.msk.f32.gmra.mxu3 %vm1965_vm11, %v1944_v44  ;;  %v2106_v60 = vpop.f32.mrf.mxu1  ;;  %v931_v46 = vrot.slane %v738_v41, 1 }
 0x307   : > { %v2107_v56 = vadd.f32 %v4515_v61, %v2106_v60  ;;  %v1255_v45 = vpop.permute.xlu0 %1254 }
 0x308   : > { %v2460_v29 = vmax.f32 %v2428_v42, 0.0  ;;  %1166 = vrot.lane.b32.xlu2 %v3843_v50, %s2929_s19  ;;  %v5068_v50 = vld [vmem:[#allocation54_spill] sm:$0xff] }
 0x309   : > { %v2184_v48 = vmax.f32 %v2107_v56, 0.0  ;;  %1654 = vrot.lane.b32.xlu1 %v4521_v14, %s4991_s8  ;;  %v1739_v47 = vsel %vm337_vm0, %v1708_v59, %v5068_v50  ;;  %v936_v56 = vrot.slane %v738_v41, 2 }
 0x30a   : > { %2492 = vst.msk [vmem:[%s4179_s21 + $0x38] sm:$0xff] %vm337_vm0, %v2460_v29  ;;  %v4529_v31 = vpop.permute.xlu2 %1256  ;;  %v1772_v51 = vsel %vm1754_vm5, %v1739_v47, %v5069_v19 }
 0x30b   : > { %v1175_v5 = vpop.permute.xlu1 %1174  ;;  %2688 = vmatmul.msk.f32.gmra.mxu2 %vm1691_vm4, %v2184_v48  ;;  %v937_v48 = vsel %vm848_vm2, %v934_v12, %v936_v56 }
 0x30c   : > { %v1780_v58 = vsel %vm1754_vm5, %v4200_v25, %v1175_v5 }
 0x30d   : > { %1262 = vrot.lane.b32.xlu0 %v5056_v57, %s2930_s15  ;;  %v1805_v57 = vsel %vm1787_vm6, %v1772_v51, %v1255_v45 }
 0x30f   : > { %v1271_v17 = vpop.permute.xlu0 %1270 }
 0x310   : > { %1358 = vrot.lane.b32.xlu2 %v5057_v0, %s2931_s20  ;;  %v1838_v0 = vsel %vm1820_vm8, %v1805_v57, %v4446_v13 }
 0x311   : > { %1182 = vrot.lane.b32.xlu1 %v5055_v1, %s2929_s19 }
 0x312   : > { %v4545_v8 = vpop.permute.xlu2 %1272 }
 0x313   : > { %v1447_v38 = vpop.permute.xlu1 %1446  ;;  %v2109_v37 = vpop.f32.mrf.mxu1 }
 0x314   : > { %v2110_v52 = vadd.f32 %v4515_v61, %v2109_v37  ;;  %v1871_v18 = vsel %vm1853_vm7, %v1838_v0, %v1447_v38 }
 0x315   : > { %1278 = vrot.lane.b32.xlu0 %v5059_v40, %s2930_s15 }
 0x316   : > { %v2185_v26 = vmax.f32 %v2110_v52, 0.0 }
 0x317   : > { %v1540_v39 = vpop.permute.xlu0 %1539 }
 0x318   : > { %2689 = vmatmul.msk.f32.gmra.mxu2 %vm1691_vm4, %v2185_v26  ;;  %v1904_v30 = vsel %vm1886_vm9, %v1871_v18, %v1540_v39  ;;  %1374 = vrot.lane.b32.xlu2 %v5058_v11, %s2931_s20  ;;  %v1813_v11 = vsel %vm1787_vm6, %v1780_v58, %v1271_v17  ;;  %v5070_v26 = vmov 0.0  }
 0x319   : > { %1454 = vrot.lane.b32.xlu1 %v3890_v53, %s2932_s9  ;;  %v1937_v36 = vsel %vm1919_vm10, %v1904_v30, %v1633_v3  ;;  %v1846_v53 = vsel %vm1820_vm8, %v1813_v11, %v4466_v23 }
 0x31a   : > { %v1542_v40 = vpop.permute.xlu2 %1541  ;;  %2664 = vmatmul.msk.f32.gmra.mxu1 %vm1965_vm11, %v1937_v36  ;;  %v5072_v36 = vld [vmem:[#allocation10_spill] sm:$0xff] }
 0x31b   : > { %v1463_v13 = vpop.permute.xlu1 %1462 }
 0x31c   : > { %v1879_v16 = vsel %vm1853_vm7, %v1846_v53, %v1463_v13 }
 0x31d   : > { %1547 = vrot.lane.b32.xlu0 %v3924_v43, %s2934_s23 }
 0x31f   : > { %v1556_v44 = vpop.permute.xlu0 %1555 }
 0x320   : > { %1640 = vrot.lane.b32.xlu2 %v3976_v35, %s4991_s8  ;;  %v1912_v42 = vsel %vm1886_vm9, %v1879_v16, %v1556_v44  ;;  %v932_v35 = vsel %vm770_vm3, %v929_v54, %v931_v46 }
 0x321   : > { %1470 = vrot.lane.b32.xlu1 %v4471_v10, %s2932_s9 }
 0x322   : > { %v2112_v3 = vpop.f32.mrf.mxu1  ;;  %v1558_v25 = vpop.permute.xlu2 %1557 }
 0x323   : > { %v2113_v43 = vadd.f32 %v4515_v61, %v2112_v3  ;;  %v1649_v60 = vpop.permute.xlu1 %1648 }
 0x324   : > { %v1945_v45 = vsel %vm1919_vm10, %v1912_v42, %v1649_v60 }
 0x325   : > { %v2186_v23 = vmax.f32 %v2113_v43, 0.0  ;;  %2672 = vmatmul.msk.f32.gmra.mxu3 %vm1965_vm11, %v1945_v45  ;;  %1563 = vrot.lane.b32.xlu0 %v932_v35, %s2934_s23 }
 0x327   : > { %2690 = vmatmul.msk.f32.gmra.mxu2 %vm1691_vm4, %v2186_v23  ;;  %v1177_v29 = vpop.permute.xlu0 %1176 }
 0x328   : > { %1168 = vrot.lane.b32.xlu2 %v3897_v55, %s2929_s19  ;;  %v1781_v47 = vsel %vm1754_vm5, %v4220_v9, %v1177_v29 }
 0x329   : > { %1656 = vrot.lane.b32.xlu1 %v937_v48, %s4991_s8 }
 0x32a   : > { %v1179_v5 = vpop.permute.xlu2 %1178 }
 0x32b   : > { %v1353_v21 = vpop.permute.xlu1 %1352  ;;  %v1782_v53 = vsel %vm1754_vm5, %v4207_v2, %v1179_v5 }
 0x32d   : > { %1264 = vrot.lane.b32.xlu0 %v5065_v20, %s2930_s15  ;;  %v1806_v20 = vsel %vm1787_vm6, %v4086_v32, %v4529_v31 }
 0x32e   : > { %v2115_v54 = vpop.f32.mrf.mxu1 }
 0x32f   : > { %v2116_v59 = vadd.f32 %v4515_v61, %v2115_v54  ;;  %v1449_v17 = vpop.permute.xlu0 %1448 }
 0x330   : > { %1360 = vrot.lane.b32.xlu2 %v5066_v24, %s2931_s20  ;;  %v1839_v24 = vsel %vm1820_vm8, %v1806_v20, %v1353_v21 }
 0x331   : > { %v2187_v50 = vmax.f32 %v2116_v59, 0.0  ;;  %1184 = vrot.lane.b32.xlu1 %v4478_v6, %s2929_s19  ;;  %v1872_v51 = vsel %vm1853_vm7, %v1839_v24, %v1449_v17  ;;  %v1814_v6 = vsel %vm1787_vm6, %v1781_v47, %v4545_v8 }
 0x332   : > { %v1451_v12 = vpop.permute.xlu2 %1450  ;;  %v1905_v9 = vsel %vm1886_vm9, %v1872_v51, %v1542_v40 }
 0x333   : > { %v1369_v55 = vpop.permute.xlu1 %1368  ;;  %2691 = vmatmul.msk.f32.gmra.mxu2 %vm1691_vm4, %v2187_v50 }
 0x334   : > { %v1847_v32 = vsel %vm1820_vm8, %v1814_v6, %v1369_v55  ;;  %v5073_v6 = vld [vmem:[#allocation26_spill] sm:$0xff] }
 0x335   : > { %1280 = vrot.lane.b32.xlu0 %v4504_v34, %s2930_s15 }
 0x337   : > { %v1465_v19 = vpop.permute.xlu0 %1464 }
 0x338   : > { %1376 = vrot.lane.b32.xlu2 %v4521_v14, %s2931_s20  ;;  %v1880_v38 = vsel %vm1853_vm7, %v1847_v32, %v1465_v19 }
 0x339   : > { %1456 = vrot.lane.b32.xlu1 %v3973_v4, %s2932_s9  ;;  %v1913_v8 = vsel %vm1886_vm9, %v1880_v38, %v1558_v25 }
 0x33a   : > { %v1467_v34 = vpop.permute.xlu2 %1466 }
 0x33b   : > { %v1635_v31 = vpop.permute.xlu1 %1634  ;;  %v2118_v57 = vpop.f32.mrf.mxu1 }
 0x33c   : > { %v2119_v37 = vadd.f32 %v4515_v61, %v2118_v57  ;;  %v1938_v52 = vsel %vm1919_vm10, %v1905_v9, %v1635_v31  ;;  %v5074_v31 = vld [vmem:[#allocation27_spill] sm:$0xff] }
 0x33d   : > { %2665 = vmatmul.msk.f32.gmra.mxu1 %vm1965_vm11, %v1938_v52  ;;  %1549 = vrot.lane.b32.xlu0 %v4000_v62, %s2934_s23  ;;  %v5071_v62 = vld [vmem:[#allocation9_spill] sm:$0xff] }
 0x33e   : > { %v2188_v4 = vmax.f32 %v2119_v37, 0.0  ;;  %v2801_v37 = vld [vmem:[%s3068_s16 + $0x40] sm:$0xff] }
 0x33f   : > { %v1651_v14 = vpop.permute.xlu0 %1650 }
 0x340   : > { %2692 = vmatmul.msk.f32.gmra.mxu2 %vm1691_vm4, %v2188_v4  ;;  %1642 = vrot.lane.b32.xlu2 %v3997_v33, %s4991_s8  ;;  %v1946_v0 = vsel %vm1919_vm10, %v1913_v8, %v1651_v14 }
 0x341   : > { %1472 = vrot.lane.b32.xlu1 %v5070_v26, %s2932_s9  ;;  %2673 = vmatmul.msk.f32.gmra.mxu3 %vm1965_vm11, %v1946_v0 }
 0x342   : > { %v1653_v18 = vpop.permute.xlu2 %1652 }
 0x343   : > { %v1259_v39 = vpop.permute.xlu1 %1258 }
 0x344   : > { %v1807_v44 = vsel %vm1787_vm6, %v4098_v7, %v1259_v39 }
 0x345   : > { %1565 = vrot.lane.b32.xlu0 %v5071_v62, %s2934_s23 }
 0x347   : > { %v1355_v30 = vpop.permute.xlu0 %1354 }
 0x348   : > { %1186 = vrot.lane.b32.xlu2 %v4471_v10, %s2929_s19  ;;  %v1840_v10 = vsel %vm1820_vm8, %v1807_v44, %v1355_v30 }
 0x349   : > { %1658 = vrot.lane.b32.xlu1 %v5072_v36, %s4991_s8  ;;  %v1873_v16 = vsel %vm1853_vm7, %v1840_v10, %v1451_v12 }
 0x34a   : > { %v2121_v33 = vpop.f32.mrf.mxu1  ;;  %v1357_v41 = vpop.permute.xlu2 %1356 }
 0x34b   : > { %v2122_v40 = vadd.f32 %v4515_v61, %v2121_v33  ;;  %v1275_v13 = vpop.permute.xlu1 %1274 }
 0x34c   : > { %v1815_v25 = vsel %vm1787_vm6, %v1782_v53, %v1275_v13 }
 0x34d   : > { %v2189_v58 = vmax.f32 %v2122_v40, 0.0  ;;  %1282 = vrot.lane.b32.xlu0 %v932_v35, %s2930_s15  ;;  %s2876_s15 = scalar_lea.hbm %s4909_s7, 512 }
 0x34f   : > { %2693 = vmatmul.msk.f32.gmra.mxu2 %vm1691_vm4, %v2189_v58  ;;  %v1371_v11 = vpop.permute.xlu0 %1370 }
 0x350   : > { %v1848_v60 = vsel %vm1820_vm8, %v1815_v25, %v1371_v11 }
 0x351   : > { %1378 = vrot.lane.b32.xlu1 %v937_v48, %s2931_s20  ;;  %v1881_v45 = vsel %vm1853_vm7, %v1848_v60, %v1467_v34  ;;  %v1719_v34 = vsel %vm1691_vm4, %v5033_v28, %v5073_v6  ;;  %s2717_s20 = sshll.u32 %s2997_s28, 8 }
 0x352   : > { %v1373_v3 = vpop.permute.xlu2 %1372  ;;  %v1750_v57 = vsel %vm337_vm0, %v1719_v34, %v5074_v31  ;;  %s2529_s8 = scalar_lea.hbm %s4909_s7, %s2717_s20 }
 0x353   : > { %v1544_v46 = vpop.permute.xlu1 %1543  ;;  %s2532_s10 = sshll.u32 %s2529_s8, 4  ;;  %s2533_s10 = int_to_ptr.hbm [resolvable:$true] %s2532_s10 }
 0x354   : > { %v1906_v42 = vsel %vm1886_vm9, %v1873_v16, %v1544_v46  ;;  %s2870_s29 = sshra.s32 %s2533_s10, 4  ;;  %s2871_s29 = int_to_ptr.hbm [resolvable:$true] %s2870_s29 }
 0x355   : > { %s2872_s28 = scalar_lea.hbm %s2871_s29, 256  ;;  %p2877_p0 = scmp.lt.s32.totalorder %s2871_s29, %s4909_s7 }
 0x356   : > { %p2873_p6 = scmp.ne.s32.totalorder %s2871_s29, %s2872_s28  ;;  %p2878_p1 = scmp.lt.s32.totalorder %s2876_s15, %s2872_s28 }
 0x357   : > { %v1637_v43 = vpop.permute.xlu0 %1636 }
 0x358   : > { %v1939_v56 = vsel %vm1919_vm10, %v1906_v42, %v1637_v43  ;;  %v5075_v43 = vld [vmem:[#allocation25_spill] sm:$0xff]  ;;  %p2874_p9 = pnand %p2873_p6, %p3026_p11  ;;  %p2879_p3 = por %p2878_p1, %p2877_p0 }
 0x359   : > { %2666 = vmatmul.msk.f32.gmra.mxu1 %vm1965_vm11, %v1939_v56  ;;  %v1720_v60 = vsel %vm1691_vm4, %v5044_v22, %v5075_v43  ;;  %v2802_v56 = vld [vmem:[%s3068_s16 + $0x48] sm:$0xff] }
 0x35a   : > { %v1639_v29 = vpop.permute.xlu2 %1638  ;;  %p2875_p13 = pneg %p2874_p9 }
 0x35b   : > { %v1560_v7 = vpop.permute.xlu1 %1559 }
 0x35c   : > { %v1914_v35 = vsel %vm1886_vm9, %v1881_v45, %v1560_v7  ;;  %p2880_p4 = pnand %p2879_p3, %p2875_p13 }
 0x35d   : > { %v1947_v2 = vsel %vm1919_vm10, %v1914_v35, %v1653_v18 }
 0x35e   : > { %2674 = vmatmul.msk.f32.gmra.mxu3 %vm1965_vm11, %v1947_v2 }
 0x35f   : > { %v1261_v23 = vpop.permute.xlu0 %1260 }
 0x360   : > { %v1808_v50 = vsel %vm1787_vm6, %v4124_v63, %v1261_v23  ;;  %v5076_v23 = vld [vmem:[#allocation23_spill] sm:$0xff] }
 0x361   : > { %v1841_v55 = vsel %vm1820_vm8, %v1808_v50, %v1357_v41 }
 0x362   : > { %v2124_v48 = vpop.f32.mrf.mxu1  ;;  %v1167_v17 = vpop.permute.xlu2 %1166 }
 0x363   : > { %v2125_v5 = vadd.f32 %v4515_v61, %v2124_v48  ;;  %v1181_v21 = vpop.permute.xlu1 %1180  ;;  %v1776_v11 = vsel %vm1754_vm5, %v4115_v49, %v1167_v17 }
 0x364   : > { %v1783_v38 = vsel %vm1754_vm5, %v1750_v57, %v1181_v21 }
 0x365   : > { %v2190_v54 = vmax.f32 %v2125_v5, 0.0 }
 0x367   : > { %2694 = vmatmul.msk.f32.gmra.mxu2 %vm1691_vm4, %v2190_v54  ;;  %v1277_v59 = vpop.permute.xlu0 %1276 }
 0x368   : > { %v1816_v4 = vsel %vm1787_vm6, %v1783_v38, %v1277_v59 }
 0x369   : > { %v1849_v0 = vsel %vm1820_vm8, %v1816_v4, %v1373_v3 }
 0x36a   : > { %v1359_v9 = vpop.permute.xlu2 %1358 }
 0x36b   : > { %v1453_v12 = vpop.permute.xlu1 %1452 }
 0x36c   : > { %v1874_v20 = vsel %vm1853_vm7, %v1841_v55, %v1453_v12 }
 0x36f   : > { %v1546_v47 = vpop.permute.xlu0 %1545 }
 0x370   : > { %v1907_v24 = vsel %vm1886_vm9, %v1874_v20, %v1546_v47 }
 0x371   : > { %v1940_v19 = vsel %vm1919_vm10, %v1907_v24, %v1639_v29  ;;  %v1751_v29 = vsel %vm337_vm0, %v1720_v60, %v5076_v23 }
 0x372   : > { %v2349_v51 = vpop.f32.mrf.mxu2  ;;  %2667 = vmatmul.msk.f32.gmra.mxu1 %vm1965_vm11, %v1940_v19  ;;  %v1375_v62 = vpop.permute.xlu2 %1374 }
 0x373   : > { %v2350_v63 = vadd.f32 %v4152_v27, %v2349_v51  ;;  %v1469_v32 = vpop.permute.xlu1 %1468  ;;  %v2803_v51 = vld [vmem:[%s3068_s16 + $0x50] sm:$0xff] }
 0x374   : > { %v1882_v28 = vsel %vm1853_vm7, %v1849_v0, %v1469_v32 }
 0x375   : > { %v2429_v52 = vadd.f32 %v2801_v37, %v2350_v63 }
 0x377   : > { %v2461_v14 = vmax.f32 %v2429_v52, 0.0  ;;  %v1562_v8 = vpop.permute.xlu0 %1561  ;;  %v4718_v52 = vld [vmem:[%s4908_s6] ss:$0 sm:$0xff] }
 0x378   : > { %v1915_v26 = vsel %vm1886_vm9, %v1882_v28, %v1562_v8  ;;  %v2805_v8 = vld [vmem:[%s3068_s16 + $0x58] sm:$0xff] }
 0x379   : > { %2493 = vst.msk [vmem:[%s4179_s21 + $0x40] sm:$0xff] %vm337_vm0, %v2461_v14 }
 0x37a   : > { %v1641_v58 = vpop.permute.xlu2 %1640 }
 0x37b   : > { %v1655_v18 = vpop.permute.xlu1 %1654 }
 0x37c   : > { %v1948_v39 = vsel %vm1919_vm10, %v1915_v26, %v1655_v18 }
 0x37d   : > { %2675 = vmatmul.msk.f32.gmra.mxu3 %vm1965_vm11, %v1948_v39 }
 0x37e   : > { %v2127_v30 = vpop.f32.mrf.mxu1 }
 0x37f   : > { %v2128_v36 = vadd.f32 %v4515_v61, %v2127_v30  ;;  %v1263_v33 = vpop.permute.xlu0 %1262 }
 0x380   : > { %v1809_v44 = vsel %vm1787_vm6, %v1776_v11, %v1263_v33  ;;  %v5078_v33 = vld [vmem:[#allocation30_spill] sm:$0xff] }
 0x381   : > { %v2191_v40 = vmax.f32 %v2128_v36, 0.0  ;;  %v1842_v46 = vsel %vm1820_vm8, %v1809_v44, %v1359_v9  ;;  %v5077_v9 = vld [vmem:[#allocation61_spill] sm:$0xff] }
 0x382   : > { %v1169_v45 = vpop.permute.xlu2 %1168 }
 0x383   : > { %v1183_v13 = vpop.permute.xlu1 %1182  ;;  %2695 = vmatmul.msk.f32.gmra.mxu2 %vm1691_vm4, %v2191_v40  ;;  %v1721_v40 = vsel %vm1691_vm4, %v5048_v15, %v5078_v33 }
 0x384   : > { %v1784_v48 = vsel %vm1754_vm5, %v1751_v29, %v1183_v13  ;;  %v5080_v29 = vld [vmem:[#allocation31_spill] sm:$0xff] }
 0x387   : > { %v1279_v41 = vpop.permute.xlu0 %1278 }
 0x388   : > { %v1817_v5 = vsel %vm1787_vm6, %v1784_v48, %v1279_v41  ;;  %v5079_v41 = vld [vmem:[#allocation32_spill] sm:$0xff]  ;;  %v1722_v48 = vsel %vm1691_vm4, %v5055_v1, %v5080_v29 }
 0x389   : > { %v1850_v59 = vsel %vm1820_vm8, %v1817_v5, %v1375_v62 }
 0x38a   : > { %v1361_v47 = vpop.permute.xlu2 %1360 }
 0x38b   : > { %v1455_v10 = vpop.permute.xlu1 %1454 }
 0x38c   : > { %v1875_v16 = vsel %vm1853_vm7, %v1842_v46, %v1455_v10  ;;  %v4736_v46 = vpop.f32.mrf.mxu3 }
 0x38e   : > { %v2352_v53 = vpop.f32.mrf.mxu2 }
 0x38f   : > { %v2353_v3 = vadd.f32 %v4152_v27, %v2352_v53  ;;  %v1548_v25 = vpop.permute.xlu0 %1547 }
 0x390   : > { %v1908_v42 = vsel %vm1886_vm9, %v1875_v16, %v1548_v25  ;;  %v2806_v25 = vld [vmem:[%s3068_s16 + $0x60] sm:$0xff] }
 0x391   : > { %v2430_v49 = vadd.f32 %v2802_v56, %v2353_v3  ;;  %v1941_v7 = vsel %vm1919_vm10, %v1908_v42, %v1641_v58  ;;  %v1752_v58 = vsel %vm337_vm0, %v1721_v40, %v5079_v41 }
 0x392   : > { %2668 = vmatmul.msk.f32.gmra.mxu1 %vm1965_vm11, %v1941_v7  ;;  %v1377_v31 = vpop.permute.xlu2 %1376 }
 0x393   : > { %v2462_v35 = vmax.f32 %v2430_v49, 0.0  ;;  %v1471_v2 = vpop.permute.xlu1 %1470 }
 0x394   : > { %v1883_v17 = vsel %vm1853_vm7, %v1850_v59, %v1471_v2  ;;  %v4748_v2 = vpop.f32.mrf.mxu3 }
 0x395   : > { %2494 = vst.msk [vmem:[%s4179_s21 + $0x48] sm:$0xff] %vm337_vm0, %v2462_v35 }
 0x397   : > { %v2130_v22 = vpop.f32.mrf.mxu1  ;;  %v1564_v21 = vpop.permute.xlu0 %1563 }
 0x398   : > { %v2131_v54 = vadd.f32 %v4515_v61, %v2130_v22  ;;  %v1916_v12 = vsel %vm1886_vm9, %v1883_v17, %v1564_v21  ;;  %v5081_v22 = vld [vmem:[#allocation34_spill] sm:$0xff] }
 0x399   : > { %v1753_v21 = vsel %vm337_vm0, %v1722_v48, %v5081_v22 }
 0x39a   : > { %v2192_v50 = vmax.f32 %v2131_v54, 0.0  ;;  %v1643_v62 = vpop.permute.xlu2 %1642 }
 0x39b   : > { %v1657_v55 = vpop.permute.xlu1 %1656  ;;  %v2355_v20 = vpop.f32.mrf.mxu2 }
 0x39c   : > { %v2356_v24 = vadd.f32 %v4152_v27, %v2355_v20  ;;  %v1949_v19 = vsel %vm1919_vm10, %v1916_v12, %v1657_v55  ;;  %2696 = vmatmul.msk.f32.gmra.mxu2 %vm1691_vm4, %v2192_v50  ;;  %v1777_v27 = vsel %vm1754_vm5, %v5077_v9, %v1169_v45 }
 0x39d   : > { %2676 = vmatmul.msk.f32.gmra.mxu3 %vm1965_vm11, %v1949_v19 }
 0x39e   : > { %v2431_v6 = vadd.f32 %v2803_v51, %v2356_v24 }
 0x39f   : > { %v1265_v34 = vpop.permute.xlu0 %1264 }
 0x3a0   : > { %v2463_v63 = vmax.f32 %v2431_v6, 0.0  ;;  %v1810_v37 = vsel %vm1787_vm6, %v1777_v27, %v1265_v34  ;;  %v2808_v27 = vld [vmem:[%s3068_s16 + $0x70] sm:$0xff] }
 0x3a1   : > { %v1843_v28 = vsel %vm1820_vm8, %v1810_v37, %v1361_v47  ;;  %v2807_v47 = vld [vmem:[%s3068_s16 + $0x68] sm:$0xff] }
 0x3a2   : > { %2495 = vst.msk [vmem:[%s4179_s21 + $0x50] sm:$0xff] %vm337_vm0, %v2463_v63  ;;  %v1187_v23 = vpop.permute.xlu2 %1186 }
 0x3a3   : > { %v1185_v32 = vpop.permute.xlu1 %1184  ;;  %v1786_v54 = vsel %vm1754_vm5, %v1753_v21, %v1187_v23  ;;  %v2149_v21 = vadd.f32 %v4515_v61, %v4736_v46 }
 0x3a4   : > { %v1785_v11 = vsel %vm1754_vm5, %v1752_v58, %v1185_v32 }
 0x3a7   : > { %v1281_v57 = vpop.permute.xlu0 %1280 }
 0x3a8   : > { %v1818_v44 = vsel %vm1787_vm6, %v1785_v11, %v1281_v57  ;;  %v2154_v19 = vpop.f32.mrf.mxu3 }
 0x3a9   : > { %v1851_v3 = vsel %vm1820_vm8, %v1818_v44, %v1377_v31  ;;  %v2155_v34 = vadd.f32 %v4515_v61, %v2154_v19 }
 0x3aa   : > { %v2358_v38 = vpop.f32.mrf.mxu2 }
 0x3ab   : > { %v2359_v4 = vadd.f32 %v4718_v52, %v2358_v38  ;;  %v1457_v14 = vpop.permute.xlu1 %1456  ;;  %v2200_v63 = vmax.f32 %v2155_v34, 0.0 }
 0x3ac   : > { %v1876_v18 = vsel %vm1853_vm7, %v1843_v28, %v1457_v14 }
 0x3ad   : > { %v2432_v0 = vadd.f32 %v2805_v8, %v2359_v4 }
 0x3af   : > { %v2464_v26 = vmax.f32 %v2432_v0, 0.0  ;;  %v1550_v39 = vpop.permute.xlu0 %1549 }
 0x3b0   : > { %v1909_v30 = vsel %vm1886_vm9, %v1876_v18, %v1550_v39 }
 0x3b1   : > { %2496 = vst.msk [vmem:[%s4179_s21 + $0x58] sm:$0xff] %vm337_vm0, %v2464_v26  ;;  %v1942_v36 = vsel %vm1919_vm10, %v1909_v30, %v1643_v62  ;;  %v2809_v30 = vld [vmem:[%s3068_s16 + $0x78] sm:$0xff] }
 0x3b2   : > { %2669 = vmatmul.msk.f32.gmra.mxu1 %vm1965_vm11, %v1942_v36 }
 0x3b3   : > { %v1473_v13 = vpop.permute.xlu1 %1472 }
 0x3b4   : > { %v1884_v15 = vsel %vm1853_vm7, %v1851_v3, %v1473_v13 }
 0x3b6   : > { %v2361_v10 = vpop.f32.mrf.mxu2 }
 0x3b7   : > { %v2362_v53 = vadd.f32 %v4718_v52, %v2361_v10  ;;  %v1566_v16 = vpop.permute.xlu0 %1565 }
 0x3b8   : > { %v1917_v56 = vsel %vm1886_vm9, %v1884_v15, %v1566_v16 }
 0x3b9   : > { %v2433_v42 = vadd.f32 %v2806_v25, %v2362_v53 }
 0x3ba   : > { %v2133_v43 = vpop.f32.mrf.mxu1 }
 0x3bb   : > { %v2465_v60 = vmax.f32 %v2433_v42, 0.0  ;;  %v2134_v49 = vadd.f32 %v4515_v61, %v2133_v43  ;;  %v1659_v7 = vpop.permute.xlu1 %1658 }
 0x3bc   : > { %v1950_v45 = vsel %vm1919_vm10, %v1917_v56, %v1659_v7 }
 0x3bd   : > { %2497 = vst.msk [vmem:[%s4179_s21 + $0x60] sm:$0xff] %vm337_vm0, %v2465_v60  ;;  %v2193_v35 = vmax.f32 %v2134_v49, 0.0  ;;  %2677 = vmatmul.msk.f32.gmra.mxu3 %vm1965_vm11, %v1950_v45  ;;  %v2811_v45 = vld [vmem:[%s3068_s16 + $0x88] sm:$0xff] }
 0x3bf   : > { %2697 = vmatmul.msk.f32.gmra.mxu2 %vm1691_vm4, %v2193_v35  ;;  %v1283_v5 = vpop.permute.xlu0 %1282 }
 0x3c0   : > { %v1819_v59 = vsel %vm1787_vm6, %v1786_v54, %v1283_v5  ;;  %v2198_v54 = vmax.f32 %v2149_v21, 0.0 }
 0x3c3   : > { %v1379_v17 = vpop.permute.xlu1 %1378  ;;  %v2364_v50 = vpop.f32.mrf.mxu2 }
 0x3c4   : > { %v1852_v12 = vsel %vm1820_vm8, %v1819_v59, %v1379_v17  ;;  %v2365_v55 = vadd.f32 %v4718_v52, %v2364_v50  ;;  %v2157_v32 = vpop.f32.mrf.mxu3  ;;  %v2152_v59 = vadd.f32 %v4515_v61, %v4748_v2 }
 0x3c5   : > { %v1885_v20 = vsel %vm1853_vm7, %v1852_v12, %v1473_v13  ;;  %v2158_v31 = vadd.f32 %v4515_v61, %v2157_v32 }
 0x3c6   : > { %v2434_v1 = vadd.f32 %v2807_v47, %v2365_v55  ;;  %v1918_v24 = vsel %vm1886_vm9, %v1885_v20, %v1566_v16  ;;  %v2810_v16 = vld [vmem:[%s3068_s16 + $0x80] sm:$0xff]  ;;  %v2199_v12 = vmax.f32 %v2152_v59, 0.0 }
 0x3c7   : > { %v1951_v51 = vsel %vm1919_vm10, %v1918_v24, %v1659_v7  ;;  %v2201_v37 = vmax.f32 %v2158_v31, 0.0 }
 0x3c8   : > { %v2466_v6 = vmax.f32 %v2434_v1, 0.0  ;;  %2678 = vmatmul.msk.f32.gmra.mxu3 %vm1965_vm11, %v1951_v51  ;;  %v2812_v1 = vld [vmem:[%s3068_s16 + $0x90] sm:$0xff] }
 0x3ca   : > { %2498 = vst.msk [vmem:[%s4179_s21 + $0x68] sm:$0xff] %vm337_vm0, %v2466_v6 }
 0x3d0   : > { %2704 = vmatmul.msk.f32.vlgmr.msra.gmra.mxu3 %vm1691_vm4, %v2200_v63  ;;  %v2813_v63 = vld [vmem:[%s3068_s16 + $0xc8] sm:$0xff] }
 0x3d2   : > { %v2367_v57 = vpop.f32.mrf.mxu2 }
 0x3d3   : > { %v2368_v9 = vadd.f32 %v4718_v52, %v2367_v57 }
 0x3d5   : > { %v2435_v38 = vadd.f32 %v2808_v27, %v2368_v9 }
 0x3d6   : > { %v2136_v4 = vpop.f32.mrf.mxu1 }
 0x3d7   : > { %v2467_v14 = vmax.f32 %v2435_v38, 0.0  ;;  %v2137_v8 = vadd.f32 %v4515_v61, %v2136_v4 }
 0x3d8   : > { %2705 = vmatmul.msk.f32.gmra.mxu3 %vm1691_vm4, %v2201_v37 }
 0x3d9   : > { %2499 = vst.msk [vmem:[%s4179_s21 + $0x70] sm:$0xff] %vm337_vm0, %v2467_v14  ;;  %v2194_v0 = vmax.f32 %v2137_v8, 0.0  ;;  %v2815_v14 = vld [vmem:[%s3068_s16 + $0x98] sm:$0xff] }
 0x3db   : > { %2698 = vmatmul.msk.f32.gmra.mxu2 %vm1691_vm4, %v2194_v0 }
 0x3e1   : > { %v2160_v28 = vpop.f32.mrf.mxu3 }
 0x3e2   : > { %v2161_v26 = vadd.f32 %v4515_v61, %v2160_v28 }
 0x3e4   : > { %v2202_v18 = vmax.f32 %v2161_v26, 0.0 }
 0x3e6   : > { %2706 = vmatmul.msk.f32.gmra.mxu3 %vm1691_vm4, %v2202_v18  ;;  %v2816_v18 = vld [vmem:[%s3068_s16 + $0xd8] sm:$0xff] }
 0x3ea   : > { %v2370_v39 = vpop.f32.mrf.mxu2 }
 0x3eb   : > { %v2371_v62 = vadd.f32 %v4718_v52, %v2370_v39 }
 0x3ed   : > { %v2436_v36 = vadd.f32 %v2809_v30, %v2371_v62 }
 0x3ef   : > { %v2468_v33 = vmax.f32 %v2436_v36, 0.0  ;;  %v2139_v40 = vpop.f32.mrf.mxu1 }
 0x3f0   : > { %v2140_v13 = vadd.f32 %v4515_v61, %v2139_v40 }
 0x3f1   : > { %2500 = vst.msk [vmem:[%s4179_s21 + $0x78] sm:$0xff] %vm337_vm0, %v2468_v33  ;;  %v2817_v33 = vld [vmem:[%s3068_s16 + $0xa0] sm:$0xff] }
 0x3f2   : > { %v2195_v41 = vmax.f32 %v2140_v13, 0.0 }
 0x3f4   : > { %2699 = vmatmul.msk.f32.gmra.mxu2 %vm1691_vm4, %v2195_v41 }
 0x400   : > { %v2163_v58 = vpop.f32.mrf.mxu3 }
 0x401   : > { %v2164_v11 = vadd.f32 %v4515_v61, %v2163_v58 }
 0x403   : > { %v2203_v44 = vmax.f32 %v2164_v11, 0.0  ;;  %v2818_v11 = vld [vmem:[%s3068_s16 + $0xe0] sm:$0xff] }
 0x405   : > { %2707 = vmatmul.msk.f32.gmra.mxu3 %vm1691_vm4, %v2203_v44 }
 0x406   : > { %v2373_v10 = vpop.f32.mrf.mxu2 }
 0x407   : > { %v2374_v53 = vadd.f32 %v4718_v52, %v2373_v10 }
 0x409   : > { %v2437_v3 = vadd.f32 %v2810_v16, %v2374_v53 }
 0x40b   : > { %v2469_v25 = vmax.f32 %v2437_v3, 0.0  ;;  %v2819_v3 = vld [vmem:[%s3068_s16 + $0xa8] sm:$0xff] }
 0x40d   : > { %2501 = vst.msk [vmem:[%s4179_s21 + $0x80] sm:$0xff] %vm337_vm0, %v2469_v25 }
 0x40f   : > { %v2142_v42 = vpop.f32.mrf.mxu1 }
 0x410   : > { %v2143_v15 = vadd.f32 %v4515_v61, %v2142_v42 }
 0x412   : > { %v2196_v43 = vmax.f32 %v2143_v15, 0.0 }
 0x414   : > { %2700 = vmatmul.msk.f32.gmra.mxu2 %vm1691_vm4, %v2196_v43 }
 0x41f   : > { %v2376_v60 = vpop.f32.mrf.mxu2 }
 0x420   : > { %v2166_v56 = vpop.f32.mrf.mxu3  ;;  %v2377_v49 = vadd.f32 %v4718_v52, %v2376_v60  ;;  %v2820_v60 = vld [vmem:[%s3068_s16 + $0xe8] sm:$0xff] }
 0x421   : > { %v2167_v7 = vadd.f32 %v4515_v61, %v2166_v56 }
 0x422   : > { %v2438_v35 = vadd.f32 %v2811_v45, %v2377_v49 }
 0x423   : > { %v2204_v23 = vmax.f32 %v2167_v7, 0.0 }
 0x424   : > { %v2470_v29 = vmax.f32 %v2438_v35, 0.0  ;;  %v2821_v35 = vld [vmem:[%s3068_s16 + $0xb0] sm:$0xff] }
 0x425   : > { %2708 = vmatmul.msk.f32.gmra.mxu3 %vm1691_vm4, %v2204_v23 }
 0x426   : > { %2502 = vst.msk [vmem:[%s4179_s21 + $0x88] sm:$0xff] %vm337_vm0, %v2470_v29 }
 0x42f   : > { %v2145_v48 = vpop.f32.mrf.mxu1 }
 0x430   : > { %v2146_v5 = vadd.f32 %v4515_v61, %v2145_v48 }
 0x432   : > { %v2197_v22 = vmax.f32 %v2146_v5, 0.0 }
 0x434   : > { %2701 = vmatmul.msk.f32.gmra.mxu2 %vm1691_vm4, %v2197_v22  ;;  %v2822_v22 = vld [vmem:[%s3068_s16 + $0xb8] sm:$0xff] }
 0x43c   : > { %2702 = vmatmul.msk.f32.gmra.mxu2 %vm1691_vm4, %v2198_v54 }
 0x440   : > { %v2169_v17 = vpop.f32.mrf.mxu3 }
 0x441   : > { %v2170_v50 = vadd.f32 %v4515_v61, %v2169_v17 }
 0x442   : > { %v2379_v55 = vpop.f32.mrf.mxu2 }
 0x443   : > { %v2205_v20 = vmax.f32 %v2170_v50, 0.0  ;;  %v2380_v47 = vadd.f32 %v4718_v52, %v2379_v55  ;;  %v2823_v55 = vld [vmem:[%s3068_s16 + $0xc0] sm:$0xff] }
 0x444   : > { %2703 = vmatmul.msk.f32.gmra.mxu2 %vm1691_vm4, %v2199_v12 }
 0x445   : > { %v2439_v46 = vadd.f32 %v2812_v1, %v2380_v47  ;;  %2709 = vmatmul.msk.f32.gmra.mxu3 %vm1691_vm4, %v2205_v20  ;;  %v2824_v47 = vld [vmem:[%s3068_s16 + $0xf0] sm:$0xff] }
 0x447   : > { %v2471_v24 = vmax.f32 %v2439_v46, 0.0 }
 0x449   : > { %2503 = vst.msk [vmem:[%s4179_s21 + $0x90] sm:$0xff] %vm337_vm0, %v2471_v24 }
 0x44b   : > { %v2172_v2 = vpop.f32.mrf.mxu3 }
 0x44c   : > { %v2173_v19 = vadd.f32 %v4515_v61, %v2172_v2  ;;  %v2814_v61 = vld [vmem:[%s3068_s16 + $0xd0] sm:$0xff] }
 0x44e   : > { %v2206_v51 = vmax.f32 %v2173_v19, 0.0 }
 0x450   : > { %2710 = vmatmul.msk.f32.gmra.mxu3 %vm1691_vm4, %v2206_v51  ;;  %v2825_v51 = vld [vmem:[%s3068_s16 + $0xf8] sm:$0xff] }
 0x453   : > { %v2400_v6 = vpop.f32.mrf.mxu3 }
 0x454   : > { %v2401_v34 = vadd.f32 %v4718_v52, %v2400_v6 }
 0x456   : > { %v2446_v32 = vadd.f32 %v2813_v63, %v2401_v34 }
 0x458   : > { %v2478_v31 = vmax.f32 %v2446_v32, 0.0 }
 0x45a   : > { %2510 = vst.msk [vmem:[%s4179_s21 + $0xc8] sm:$0xff] %vm337_vm0, %v2478_v31 }
 0x45b   : > { %v2403_v57 = vpop.f32.mrf.mxu3 }
 0x45c   : > { %v2404_v9 = vadd.f32 %v4718_v52, %v2403_v57 }
 0x45e   : > { %v2447_v27 = vadd.f32 %v2814_v61, %v2404_v9  ;;  %v2382_v38 = vpop.f32.mrf.mxu2 }
 0x45f   : > { %v2383_v37 = vadd.f32 %v4718_v52, %v2382_v38 }
 0x460   : > { %v2479_v4 = vmax.f32 %v2447_v27, 0.0 }
 0x461   : > { %v2440_v8 = vadd.f32 %v2815_v14, %v2383_v37 }
 0x462   : > { %2511 = vst.msk [vmem:[%s4179_s21 + $0xd0] sm:$0xff] %vm337_vm0, %v2479_v4 }
 0x463   : > { %v2472_v0 = vmax.f32 %v2440_v8, 0.0 }
 0x465   : > { %2504 = vst.msk [vmem:[%s4179_s21 + $0x98] sm:$0xff] %vm337_vm0, %v2472_v0 }
 0x469   : > { %v2406_v28 = vpop.f32.mrf.mxu3 }
 0x46a   : > { %v2407_v26 = vadd.f32 %v4718_v52, %v2406_v28 }
 0x46c   : > { %v2448_v39 = vadd.f32 %v2816_v18, %v2407_v26 }
 0x46e   : > { %v2480_v62 = vmax.f32 %v2448_v39, 0.0 }
 0x470   : > { %2512 = vst.msk [vmem:[%s4179_s21 + $0xd8] sm:$0xff] %vm337_vm0, %v2480_v62 }
 0x477   : > { %v2385_v30 = vpop.f32.mrf.mxu2 }
 0x478   : > { %v2386_v36 = vadd.f32 %v4718_v52, %v2385_v30 }
 0x47a   : > { %v2441_v40 = vadd.f32 %v2817_v33, %v2386_v36 }
 0x47c   : > { %v2473_v13 = vmax.f32 %v2441_v40, 0.0 }
 0x47e   : > { %2505 = vst.msk [vmem:[%s4179_s21 + $0xa0] sm:$0xff] %vm337_vm0, %v2473_v13 }
 0x488   : > { %v2409_v41 = vpop.f32.mrf.mxu3 }
 0x489   : > { %v2410_v58 = vadd.f32 %v4718_v52, %v2409_v41 }
 0x48b   : > { %v2449_v44 = vadd.f32 %v2818_v11, %v2410_v58 }
 0x48d   : > { %v2481_v10 = vmax.f32 %v2449_v44, 0.0 }
 0x48f   : > { %2513 = vst.msk [vmem:[%s4179_s21 + $0xe0] sm:$0xff] %vm337_vm0, %v2481_v10 }
 0x497   : > { %v2388_v53 = vpop.f32.mrf.mxu2 }
 0x498   : > { %v2389_v16 = vadd.f32 %v4718_v52, %v2388_v53 }
 0x49a   : > { %v2442_v25 = vadd.f32 %v2819_v3, %v2389_v16 }
 0x49c   : > { %v2474_v42 = vmax.f32 %v2442_v25, 0.0 }
 0x49e   : > { %2506 = vst.msk [vmem:[%s4179_s21 + $0xa8] sm:$0xff] %vm337_vm0, %v2474_v42 }
 0x4a8   : > { %v2412_v15 = vpop.f32.mrf.mxu3 }
 0x4a9   : > { %v2413_v43 = vadd.f32 %v4718_v52, %v2412_v15 }
 0x4ab   : > { %v2450_v56 = vadd.f32 %v2820_v60, %v2413_v43 }
 0x4ad   : > { %v2482_v49 = vmax.f32 %v2450_v56, 0.0 }
 0x4af   : > { %2514 = vst.msk [vmem:[%s4179_s21 + $0xe8] sm:$0xff] %vm337_vm0, %v2482_v49 }
 0x4b7   : > { %v2391_v7 = vpop.f32.mrf.mxu2 }
 0x4b8   : > { %v2392_v45 = vadd.f32 %v4718_v52, %v2391_v7 }
 0x4ba   : > { %v2443_v23 = vadd.f32 %v2821_v35, %v2392_v45 }
 0x4bc   : > { %v2475_v29 = vmax.f32 %v2443_v23, 0.0 }
 0x4be   : > { %2507 = vst.msk [vmem:[%s4179_s21 + $0xb0] sm:$0xff] %vm337_vm0, %v2475_v29 }
 0x4bf   : > { %v2394_v48 = vpop.f32.mrf.mxu2 }
 0x4c0   : > { %v2395_v5 = vadd.f32 %v4718_v52, %v2394_v48 }
 0x4c2   : > { %v2444_v21 = vadd.f32 %v2822_v22, %v2395_v5 }
 0x4c4   : > { %v2476_v54 = vmax.f32 %v2444_v21, 0.0 }
 0x4c6   : > { %2508 = vst.msk [vmem:[%s4179_s21 + $0xb8] sm:$0xff] %vm337_vm0, %v2476_v54 }
 0x4c7   : > { %v2397_v59 = vpop.f32.mrf.mxu2 }
 0x4c8   : > { %v2398_v17 = vadd.f32 %v4718_v52, %v2397_v59  ;;  %v2415_v50 = vpop.f32.mrf.mxu3 }
 0x4c9   : > { %v2416_v12 = vadd.f32 %v4718_v52, %v2415_v50 }
 0x4ca   : > { %v2445_v20 = vadd.f32 %v2823_v55, %v2398_v17 }
 0x4cb   : > { %v2451_v1 = vadd.f32 %v2824_v47, %v2416_v12 }
 0x4cc   : > { %v2477_v46 = vmax.f32 %v2445_v20, 0.0 }
 0x4cd   : > { %v2483_v24 = vmax.f32 %v2451_v1, 0.0 }
 0x4ce   : > { %2509 = vst.msk [vmem:[%s4179_s21 + $0xc0] sm:$0xff] %vm337_vm0, %v2477_v46 }
 0x4cf   : > { %2515 = vst.msk [vmem:[%s4179_s21 + $0xf0] sm:$0xff] %vm337_vm0, %v2483_v24 }
 0x4d3   : > { %v2418_v2 = vpop.f32.mrf.mxu3 }
 0x4d4   : > { %v2419_v19 = vadd.f32 %v4718_v52, %v2418_v2 }
 0x4d6   : > { %v2452_v6 = vadd.f32 %v2825_v51, %v2419_v19 }
 0x4d8   : > { %v2484_v34 = vmax.f32 %v2452_v6, 0.0 }
 0x4da   : > { %2516 = vst.msk [vmem:[%s4179_s21 + $0xf8] sm:$0xff] %vm337_vm0, %v2484_v34 }
 0x4db   : > { %2883 = shalt.err (!%p2880_p4)
}
 0x4dc   : > { %s2935_s22 = smov 128  }
 0x4dd   : > { %2732 = dma.vmem_to_hbm [thread:$0]  (%p3026_p11), %s2531_s17, 4096, %s2533_s10, %s2518_s18, %s2935_s22, %s2935_s22, %s2927_s12  }
 0x4de PF: > { %s2547_s21 = sand.u32 1, %s2910_s24   ;;  %p5082_p7 = scmp.ge.s32.totalorder %s2922_s27, 2 }
 0x4df   : > { %s2548_s9 = scalar_lea.sflag [#allocation4], %s2547_s21 }
 0x4e0   : > { %p2739_p5 = pnand %p5082_p7, %p3030_p12 }
 0x4e2   : > { %p2740_p8 = pneg %p2739_p5 }
 0x4e4   : > { %2905 = dma.done.wait (%p2740_p8), %s2548_s9, 4096  }
 0x4e5   : > { %2907 = vsyncadd (%p2740_p8), %s2548_s9, 4294963200  ;;  %s5083_s23 = sld [smem:[#allocation8_spill]]  ;;  %p20_p10 = scmp.ge.s32.totalorder %s3001_s30, 4  }
 0x4e6   : > { %s5084_s24 = smov %s2914_s25  ;;  %s5085_s25 = smov %s2918_s26 }
 0x4e7   : > { %s5087_s27 = smov %s3001_s30  ;;  %22 = sbr.rel (!%p20_p10) target bundleno = 5 (0x5), region = 93 }
 0x4eb   : > { %s5086_s26 = smov %s5083_s23 }
 0x4ec   :  { %2554 = vsyncpa [#allocation3], 1 }
 0x4ed   :  { %2556 = vsyncpa [#allocation3 + $0x1], 1 }
 0x4ee   :  { %2557 = vsyncpa [#allocation4], 1 }
 0x4ef   :  { %2559 = vsyncpa [#allocation4 + $0x1], 1 }

</bundles_post_ra>
